<compile_context>
chip_gen: v7x
topology: tpu7x:2x2x1
jax: 0.10.0
libtpu: 0.0.40
codegen_flags: <defaults>
</compile_context>

<pallas_src>
import functools

import jax
import jax.numpy as jnp
import numpy as np
from jax.experimental import pallas as pl
from jax.experimental.pallas import tpu as pltpu


def gen_kernel(x_ref, Wpre_ref, bpre_ref, WhT_ref, Wdec_ref, bdec_ref,
               out_ref, uh_s, *, unroll):
    T, Bc, enc_in = x_ref.shape
    dim_h = WhT_ref.shape[0]
    cdt = WhT_ref.dtype  # MXU input dtype (f32 or bf16); accumulation is always f32

    # --- Phase 1: fused Encoder.encode + RNN input projection, one GEMM for ALL t ---
    #   u = x @ (We.T @ Wx.T) + (be @ Wx.T + bh)
    x_all = x_ref[...].reshape(T * Bc, enc_in).astype(cdt)
    u = jnp.dot(x_all, Wpre_ref[...],
                preferred_element_type=jnp.float32) + bpre_ref[...]
    uh_s[...] = u.reshape(T, Bc, dim_h)

    # --- Phase 2: Elman recurrence; h kept VMEM-resident (no loop-carried vregs). ---
    # uh_s[t] holds u_t until step t overwrites it with h_t (f32 state, f32 tanh).
    WhT = WhT_ref[...]
    uh_s[0] = jnp.tanh(uh_s[0])                       # h_0 = 0  =>  h_1 = tanh(u_0)

    def step(t, carry):
        h_prev = uh_s[t - 1].astype(cdt)
        uh_s[t] = jnp.tanh(uh_s[t] + jnp.dot(h_prev, WhT,
                                             preferred_element_type=jnp.float32))
        return carry

    jax.lax.fori_loop(1, T, step, 0, unroll=unroll)

    # --- Phase 3: fused RNN.decode + Encoder.decode, one GEMM for ALL t ---
    #   out = h @ (Wd.T @ We) + (bd @ We + biais)
    hs = uh_s[...].reshape(T * Bc, dim_h).astype(cdt)
    out = jnp.dot(hs, Wdec_ref[...],
                  preferred_element_type=jnp.float32) + bdec_ref[...]
    out_ref[...] = out.reshape(T, Bc, enc_in).astype(out_ref.dtype)   # lane-dense slab store


def _num_batch_chunks(B):
    """2 chunks on v7x (one per TensorCore), otherwise 1 (v5e/v6e are single-TC;
    more chunks only serialize tiny matmuls with grid-step overhead)."""
    try:
        kind = jax.devices()[0].device_kind.lower()
    except Exception:
        kind = ""
    n = 2 if "v7" in kind else 1
    if B % n != 0 or (B // n) % 8 != 0:
        n = 1
    return n


def gen_forward(x, We, be, Wx, Wh, bh, Wd, bd, biais, *,
                num_chunks=None, use_bf16=False):
    """x: (T, B, enc_in) float32. Returns (T, B, enc_in) float32."""
    T, B, enc_in = x.shape
    enc_out = We.shape[0]
    dim_h = Wx.shape[0]
    dim_out = Wd.shape[0]
    assert Wx.shape[1] == enc_out and dim_out == enc_out
    assert Wh.shape == (dim_h, dim_h)

    if num_chunks is None:
        num_chunks = _num_batch_chunks(B)
    assert B % num_chunks == 0
    b_chunk = B // num_chunks

    # ---- wrapper-side fusion (done once, in f32) ----
    Wpre = We.T @ Wx.T                       # (enc_in, dim_h)   fused encode + input proj
    bpre = be @ Wx.T + bh                    # (dim_h,)
    WhT = Wh.T                               # (dim_h, dim_h)
    Wdec = Wd.T @ We                         # (dim_h, enc_in)   fused decode weight
    bdec = bd @ We + biais                   # (enc_in,)         fused decode bias

    wdt = jnp.bfloat16 if use_bf16 else jnp.float32   # MXU input dtype (accum stays f32)
    Wpre = Wpre.astype(wdt)
    WhT = WhT.astype(wdt)
    Wdec = Wdec.astype(wdt)
    bpre2 = bpre.reshape(1, dim_h).astype(jnp.float32)
    bdec2 = bdec.reshape(1, enc_in).astype(jnp.float32)

    # Full unroll only for short recurrences; partial unroll keeps code size bounded.
    unroll = True if T <= 32 else 8
    kernel = functools.partial(gen_kernel, unroll=unroll)

    # Single (T, b_chunk, dim_h) f32 scratch = T*b_chunk*dim_h*4 bytes.
    # For very long T this should be decoded in Td-sized chunks to respect v7x's 64 MiB VMEM;
    # at the shapes used here it is a few hundred KiB.

    def full_spec(a):
        nd = a.ndim
        return pl.BlockSpec(a.shape, lambda b, _nd=nd: (0,) * _nd)

    grid_spec = pltpu.PrefetchScalarGridSpec(
        num_scalar_prefetch=0,
        grid=(num_chunks,),                      # independent batch chunks (v7x: one per TC)
        in_specs=[
            pl.BlockSpec((T, b_chunk, enc_in), lambda b: (0, b, 0)),   # x, one batch chunk
            full_spec(Wpre), full_spec(bpre2),
            full_spec(WhT),
            full_spec(Wdec), full_spec(bdec2),
        ],
        out_specs=pl.BlockSpec((T, b_chunk, enc_in), lambda b: (0, b, 0)),
        scratch_shapes=[
            pltpu.VMEM((T, b_chunk, dim_h), jnp.float32),   # u_t, overwritten in-place with h_t
        ],
    )

    return pl.pallas_call(
        kernel,
        out_shape=jax.ShapeDtypeStruct((T, B, enc_in), jnp.float32),
        grid_spec=grid_spec,
        compiler_params=pltpu.CompilerParams(
            dimension_semantics=("parallel",),   # batch chunks are independent
        ),
    )(x, Wpre, bpre2, WhT, Wdec, bdec2)


def gen_reference(x, We, be, Wx, Wh, bh, Wd, bd, biais):
    """Pure-JAX reference of Gen.forward (unfused, matches PyTorch op-for-op)."""
    T, B, _ = x.shape
    dim_h = Wx.shape[0]
    x_enc = x @ We.T + be                        # (T, B, enc_out)

    def step(h, xt):
        h_new = jnp.tanh(xt @ Wx.T + h @ Wh.T + bh)
        return h_new, h_new

    h0 = jnp.zeros((B, dim_h), jnp.float32)
    _, hs = jax.lax.scan(step, h0, x_enc)        # (T, B, dim_h)
    y = hs @ Wd.T + bd                           # (T, B, dim_out)
    return y @ We + biais                        # (T, B, enc_in)


if __name__ == "__main__":
    # Small shapes consistent with the module:
    #   enc_in = vocab size (char-level ~100 -> 128, lane-dense),
    #   enc_out = embedding dim = RNN dim_in = RNN dim_out, dim_h = hidden size.
    T, B = 16, 16
    enc_in, enc_out, dim_h = 128, 64, 128
    dim_in, dim_out = enc_out, enc_out

    key = jax.random.PRNGKey(0)
    ks = jax.random.split(key, 10)
    x = jax.random.normal(ks[0], (T, B, enc_in), jnp.float32)

    # Deterministic synthetic parameters (PyTorch nn.Linear convention: W is (out, in)).
    We = jax.random.normal(ks[1], (enc_out, enc_in), jnp.float32) * 0.1
    be = jax.random.normal(ks[2], (enc_out,), jnp.float32) * 0.1
    Wx = jax.random.normal(ks[3], (dim_h, dim_in), jnp.float32) * 0.1
    Wh = jax.random.normal(ks[4], (dim_h, dim_h), jnp.float32) * 0.1
    bh = jax.random.normal(ks[5], (dim_h,), jnp.float32) * 0.1
    Wd = jax.random.normal(ks[6], (dim_out, dim_h), jnp.float32) * 0.1
    bd = jax.random.normal(ks[7], (dim_out,), jnp.float32) * 0.1
    biais = jax.random.uniform(ks[8], (enc_in,), jnp.float32)   # Encoder.biais ~ torch.rand

    ref = gen_reference(x, We, be, Wx, Wh, bh, Wd, bd, biais)

    # f32 MXU path: tolerance relaxed slightly because the wrapper-side weight fusions
    # (We.T@Wx.T, Wd.T@We) change f32 accumulation order.
    out = gen_forward(x, We, be, Wx, Wh, bh, Wd, bd, biais)
    out = jax.block_until_ready(out)
    np.testing.assert_allclose(np.asarray(out), np.asarray(ref), rtol=1e-4, atol=1e-4)

    # bf16 MXU-input path (f32 accumulation, f32 hidden state / tanh): loose tolerance,
    # recurrence error compounds over T.
    out_bf16 = gen_forward(x, We, be, Wx, Wh, bh, Wd, bd, biais, use_bf16=True)
    out_bf16 = jax.block_until_ready(out_bf16)
    np.testing.assert_allclose(np.asarray(out_bf16), np.asarray(ref), rtol=1e-1, atol=2e-1)

    print("KERNEL_OK")
</pallas_src>

<mosaic_0001>
module attributes {stable_mosaic.version = 11 : i64} {
  func.func @gen_kernel(%arg0: i32, %arg1: memref<16x16x128xf32, #tpu.memory_space<vmem>>, %arg2: memref<128x128xf32, #tpu.memory_space<vmem>>, %arg3: memref<1x128xf32, #tpu.memory_space<vmem>>, %arg4: memref<128x128xf32, #tpu.memory_space<vmem>>, %arg5: memref<128x128xf32, #tpu.memory_space<vmem>>, %arg6: memref<1x128xf32, #tpu.memory_space<vmem>>, %arg7: memref<16x16x128xf32, #tpu.memory_space<vmem>>, %arg8: memref<16x16x128xf32, #tpu.memory_space<vmem>>) attributes {dimension_semantics = [#tpu.dimension_semantics<parallel>], iteration_bounds = array<i64: 1>, scalar_prefetch = 0 : i64, scratch_operands = 1 : i64, tpu.core_type = #tpu.core_type<tc>, window_params = [{transform_indices = @transform_0, window_bounds = array<i64: 16, 16, 128>}, {pipeline_mode = #tpu.pipeline_mode<synchronous>, transform_indices = @transform_1, window_bounds = array<i64: 128, 128>}, {pipeline_mode = #tpu.pipeline_mode<synchronous>, transform_indices = @transform_2, window_bounds = array<i64: 1, 128>}, {pipeline_mode = #tpu.pipeline_mode<synchronous>, transform_indices = @transform_3, window_bounds = array<i64: 128, 128>}, {pipeline_mode = #tpu.pipeline_mode<synchronous>, transform_indices = @transform_4, window_bounds = array<i64: 128, 128>}, {pipeline_mode = #tpu.pipeline_mode<synchronous>, transform_indices = @transform_5, window_bounds = array<i64: 1, 128>}, {transform_indices = @transform_6, window_bounds = array<i64: 16, 16, 128>}]} {
    %c0 = arith.constant 0 : index
    %c0_0 = arith.constant 0 : index
    %c0_1 = arith.constant 0 : index
    %0 = vector.load %arg1[%c0, %c0_0, %c0_1] : memref<16x16x128xf32, #tpu.memory_space<vmem>>, vector<16x16x128xf32>
    %1 = vector.shape_cast %0 : vector<16x16x128xf32> to vector<256x128xf32>
    %c0_2 = arith.constant 0 : index
    %c0_3 = arith.constant 0 : index
    %2 = vector.load %arg2[%c0_2, %c0_3] : memref<128x128xf32, #tpu.memory_space<vmem>>, vector<128x128xf32>
    %cst = arith.constant dense<0.000000e+00> : vector<256x128xf32>
    %3 = tpu.matmul %1, %2, %cst {dimension_numbers = #tpu.dot_dimension_numbers<[1], [0], [0], [1], [0, 0, 1, 1], [], []>} : vector<256x128xf32>, vector<128x128xf32>, vector<256x128xf32> -> vector<256x128xf32>
    %c0_4 = arith.constant 0 : index
    %c0_5 = arith.constant 0 : index
    %4 = vector.load %arg3[%c0_4, %c0_5] : memref<1x128xf32, #tpu.memory_space<vmem>>, vector<1x128xf32>
    %5 = vector.broadcast %4 : vector<1x128xf32> to vector<256x128xf32>
    %6 = arith.addf %3, %5 : vector<256x128xf32>
    %7 = vector.shape_cast %6 : vector<256x128xf32> to vector<16x16x128xf32>
    %c0_6 = arith.constant 0 : index
    %c0_7 = arith.constant 0 : index
    %c0_8 = arith.constant 0 : index
    %8 = vector.load %arg8[%c0_6, %c0_7, %c0_8] : memref<16x16x128xf32, #tpu.memory_space<vmem>>, vector<16x16x128xf32>
    tpu.vector_store %arg8[%c0_6, %c0_7, %c0_8], %7 {strides = array<i32>} : memref<16x16x128xf32, #tpu.memory_space<vmem>>, vector<16x16x128xf32>,
    %c0_9 = arith.constant 0 : index
    %c0_10 = arith.constant 0 : index
    %9 = vector.load %arg4[%c0_9, %c0_10] : memref<128x128xf32, #tpu.memory_space<vmem>>, vector<128x128xf32>
    %c0_11 = arith.constant 0 : index
    %c0_12 = arith.constant 0 : index
    %c0_13 = arith.constant 0 : index
    %10 = vector.load %arg8[%c0_11, %c0_12, %c0_13] : memref<16x16x128xf32, #tpu.memory_space<vmem>>, vector<1x16x128xf32>
    %11 = vector.shape_cast %10 : vector<1x16x128xf32> to vector<16x128xf32>
    %12 = math.tanh %11 : vector<16x128xf32>
    %c0_14 = arith.constant 0 : index
    %c0_15 = arith.constant 0 : index
    %c0_16 = arith.constant 0 : index
    %13 = vector.load %arg8[%c0_14, %c0_15, %c0_16] : memref<16x16x128xf32, #tpu.memory_space<vmem>>, vector<1x16x128xf32>
    %14 = vector.shape_cast %13 : vector<1x16x128xf32> to vector<16x128xf32>
    %15 = vector.shape_cast %12 : vector<16x128xf32> to vector<1x16x128xf32>
    tpu.vector_store %arg8[%c0_14, %c0_15, %c0_16], %15 {strides = array<i32>} : memref<16x16x128xf32, #tpu.memory_space<vmem>>, vector<1x16x128xf32>,
    %c1_i32 = arith.constant 1 : i32
    %c1_i32_17 = arith.constant 1 : i32
    %16 = arith.subi %c1_i32, %c1_i32_17 : i32
    %17 = arith.index_cast %16 : i32 to index
    %c0_18 = arith.constant 0 : index
    %c0_19 = arith.constant 0 : index
    %18 = vector.load %arg8[%17, %c0_18, %c0_19] : memref<16x16x128xf32, #tpu.memory_space<vmem>>, vector<1x16x128xf32>
    %19 = vector.shape_cast %18 : vector<1x16x128xf32> to vector<16x128xf32>
    %20 = arith.index_cast %c1_i32 : i32 to index
    %c0_20 = arith.constant 0 : index
    %c0_21 = arith.constant 0 : index
    %21 = vector.load %arg8[%20, %c0_20, %c0_21] : memref<16x16x128xf32, #tpu.memory_space<vmem>>, vector<1x16x128xf32>
    %22 = vector.shape_cast %21 : vector<1x16x128xf32> to vector<16x128xf32>
    %cst_22 = arith.constant dense<0.000000e+00> : vector<16x128xf32>
    %23 = tpu.matmul %19, %9, %cst_22 {dimension_numbers = #tpu.dot_dimension_numbers<[1], [0], [0], [1], [0, 0, 1, 1], [], []>} : vector<16x128xf32>, vector<128x128xf32>, vector<16x128xf32> -> vector<16x128xf32>
    %24 = arith.addf %22, %23 : vector<16x128xf32>
    %25 = math.tanh %24 : vector<16x128xf32>
    %26 = arith.index_cast %c1_i32 : i32 to index
    %c0_23 = arith.constant 0 : index
    %c0_24 = arith.constant 0 : index
    %27 = vector.load %arg8[%26, %c0_23, %c0_24] : memref<16x16x128xf32, #tpu.memory_space<vmem>>, vector<1x16x128xf32>
    %28 = vector.shape_cast %27 : vector<1x16x128xf32> to vector<16x128xf32>
    %29 = vector.shape_cast %25 : vector<16x128xf32> to vector<1x16x128xf32>
    tpu.vector_store %arg8[%26, %c0_23, %c0_24], %29 {strides = array<i32>} : memref<16x16x128xf32, #tpu.memory_space<vmem>>, vector<1x16x128xf32>,
    %c2_i32 = arith.constant 2 : i32
    %c1_i32_25 = arith.constant 1 : i32
    %30 = arith.subi %c2_i32, %c1_i32_25 : i32
    %31 = arith.index_cast %30 : i32 to index
    %c0_26 = arith.constant 0 : index
    %c0_27 = arith.constant 0 : index
    %32 = vector.load %arg8[%31, %c0_26, %c0_27] : memref<16x16x128xf32, #tpu.memory_space<vmem>>, vector<1x16x128xf32>
    %33 = vector.shape_cast %32 : vector<1x16x128xf32> to vector<16x128xf32>
    %34 = arith.index_cast %c2_i32 : i32 to index
    %c0_28 = arith.constant 0 : index
    %c0_29 = arith.constant 0 : index
    %35 = vector.load %arg8[%34, %c0_28, %c0_29] : memref<16x16x128xf32, #tpu.memory_space<vmem>>, vector<1x16x128xf32>
    %36 = vector.shape_cast %35 : vector<1x16x128xf32> to vector<16x128xf32>
    %cst_30 = arith.constant dense<0.000000e+00> : vector<16x128xf32>
    %37 = tpu.matmul %33, %9, %cst_30 {dimension_numbers = #tpu.dot_dimension_numbers<[1], [0], [0], [1], [0, 0, 1, 1], [], []>} : vector<16x128xf32>, vector<128x128xf32>, vector<16x128xf32> -> vector<16x128xf32>
    %38 = arith.addf %36, %37 : vector<16x128xf32>
    %39 = math.tanh %38 : vector<16x128xf32>
    %40 = arith.index_cast %c2_i32 : i32 to index
    %c0_31 = arith.constant 0 : index
    %c0_32 = arith.constant 0 : index
    %41 = vector.load %arg8[%40, %c0_31, %c0_32] : memref<16x16x128xf32, #tpu.memory_space<vmem>>, vector<1x16x128xf32>
    %42 = vector.shape_cast %41 : vector<1x16x128xf32> to vector<16x128xf32>
    %43 = vector.shape_cast %39 : vector<16x128xf32> to vector<1x16x128xf32>
    tpu.vector_store %arg8[%40, %c0_31, %c0_32], %43 {strides = array<i32>} : memref<16x16x128xf32, #tpu.memory_space<vmem>>, vector<1x16x128xf32>,
    %c3_i32 = arith.constant 3 : i32
    %c1_i32_33 = arith.constant 1 : i32
    %44 = arith.subi %c3_i32, %c1_i32_33 : i32
    %45 = arith.index_cast %44 : i32 to index
    %c0_34 = arith.constant 0 : index
    %c0_35 = arith.constant 0 : index
    %46 = vector.load %arg8[%45, %c0_34, %c0_35] : memref<16x16x128xf32, #tpu.memory_space<vmem>>, vector<1x16x128xf32>
    %47 = vector.shape_cast %46 : vector<1x16x128xf32> to vector<16x128xf32>
    %48 = arith.index_cast %c3_i32 : i32 to index
    %c0_36 = arith.constant 0 : index
    %c0_37 = arith.constant 0 : index
    %49 = vector.load %arg8[%48, %c0_36, %c0_37] : memref<16x16x128xf32, #tpu.memory_space<vmem>>, vector<1x16x128xf32>
    %50 = vector.shape_cast %49 : vector<1x16x128xf32> to vector<16x128xf32>
    %cst_38 = arith.constant dense<0.000000e+00> : vector<16x128xf32>
    %51 = tpu.matmul %47, %9, %cst_38 {dimension_numbers = #tpu.dot_dimension_numbers<[1], [0], [0], [1], [0, 0, 1, 1], [], []>} : vector<16x128xf32>, vector<128x128xf32>, vector<16x128xf32> -> vector<16x128xf32>
    %52 = arith.addf %50, %51 : vector<16x128xf32>
    %53 = math.tanh %52 : vector<16x128xf32>
    %54 = arith.index_cast %c3_i32 : i32 to index
    %c0_39 = arith.constant 0 : index
    %c0_40 = arith.constant 0 : index
    %55 = vector.load %arg8[%54, %c0_39, %c0_40] : memref<16x16x128xf32, #tpu.memory_space<vmem>>, vector<1x16x128xf32>
    %56 = vector.shape_cast %55 : vector<1x16x128xf32> to vector<16x128xf32>
    %57 = vector.shape_cast %53 : vector<16x128xf32> to vector<1x16x128xf32>
    tpu.vector_store %arg8[%54, %c0_39, %c0_40], %57 {strides = array<i32>} : memref<16x16x128xf32, #tpu.memory_space<vmem>>, vector<1x16x128xf32>,
    %c4_i32 = arith.constant 4 : i32
    %c1_i32_41 = arith.constant 1 : i32
    %58 = arith.subi %c4_i32, %c1_i32_41 : i32
    %59 = arith.index_cast %58 : i32 to index
    %c0_42 = arith.constant 0 : index
    %c0_43 = arith.constant 0 : index
    %60 = vector.load %arg8[%59, %c0_42, %c0_43] : memref<16x16x128xf32, #tpu.memory_space<vmem>>, vector<1x16x128xf32>
    %61 = vector.shape_cast %60 : vector<1x16x128xf32> to vector<16x128xf32>
    %62 = arith.index_cast %c4_i32 : i32 to index
    %c0_44 = arith.constant 0 : index
    %c0_45 = arith.constant 0 : index
    %63 = vector.load %arg8[%62, %c0_44, %c0_45] : memref<16x16x128xf32, #tpu.memory_space<vmem>>, vector<1x16x128xf32>
    %64 = vector.shape_cast %63 : vector<1x16x128xf32> to vector<16x128xf32>
    %cst_46 = arith.constant dense<0.000000e+00> : vector<16x128xf32>
    %65 = tpu.matmul %61, %9, %cst_46 {dimension_numbers = #tpu.dot_dimension_numbers<[1], [0], [0], [1], [0, 0, 1, 1], [], []>} : vector<16x128xf32>, vector<128x128xf32>, vector<16x128xf32> -> vector<16x128xf32>
    %66 = arith.addf %64, %65 : vector<16x128xf32>
    %67 = math.tanh %66 : vector<16x128xf32>
    %68 = arith.index_cast %c4_i32 : i32 to index
    %c0_47 = arith.constant 0 : index
    %c0_48 = arith.constant 0 : index
    %69 = vector.load %arg8[%68, %c0_47, %c0_48] : memref<16x16x128xf32, #tpu.memory_space<vmem>>, vector<1x16x128xf32>
    %70 = vector.shape_cast %69 : vector<1x16x128xf32> to vector<16x128xf32>
    %71 = vector.shape_cast %67 : vector<16x128xf32> to vector<1x16x128xf32>
    tpu.vector_store %arg8[%68, %c0_47, %c0_48], %71 {strides = array<i32>} : memref<16x16x128xf32, #tpu.memory_space<vmem>>, vector<1x16x128xf32>,
    %c5_i32 = arith.constant 5 : i32
    %c1_i32_49 = arith.constant 1 : i32
    %72 = arith.subi %c5_i32, %c1_i32_49 : i32
    %73 = arith.index_cast %72 : i32 to index
    %c0_50 = arith.constant 0 : index
    %c0_51 = arith.constant 0 : index
    %74 = vector.load %arg8[%73, %c0_50, %c0_51] : memref<16x16x128xf32, #tpu.memory_space<vmem>>, vector<1x16x128xf32>
    %75 = vector.shape_cast %74 : vector<1x16x128xf32> to vector<16x128xf32>
    %76 = arith.index_cast %c5_i32 : i32 to index
    %c0_52 = arith.constant 0 : index
    %c0_53 = arith.constant 0 : index
    %77 = vector.load %arg8[%76, %c0_52, %c0_53] : memref<16x16x128xf32, #tpu.memory_space<vmem>>, vector<1x16x128xf32>
    %78 = vector.shape_cast %77 : vector<1x16x128xf32> to vector<16x128xf32>
    %cst_54 = arith.constant dense<0.000000e+00> : vector<16x128xf32>
    %79 = tpu.matmul %75, %9, %cst_54 {dimension_numbers = #tpu.dot_dimension_numbers<[1], [0], [0], [1], [0, 0, 1, 1], [], []>} : vector<16x128xf32>, vector<128x128xf32>, vector<16x128xf32> -> vector<16x128xf32>
    %80 = arith.addf %78, %79 : vector<16x128xf32>
    %81 = math.tanh %80 : vector<16x128xf32>
    %82 = arith.index_cast %c5_i32 : i32 to index
    %c0_55 = arith.constant 0 : index
    %c0_56 = arith.constant 0 : index
    %83 = vector.load %arg8[%82, %c0_55, %c0_56] : memref<16x16x128xf32, #tpu.memory_space<vmem>>, vector<1x16x128xf32>
    %84 = vector.shape_cast %83 : vector<1x16x128xf32> to vector<16x128xf32>
    %85 = vector.shape_cast %81 : vector<16x128xf32> to vector<1x16x128xf32>
    tpu.vector_store %arg8[%82, %c0_55, %c0_56], %85 {strides = array<i32>} : memref<16x16x128xf32, #tpu.memory_space<vmem>>, vector<1x16x128xf32>,
    %c6_i32 = arith.constant 6 : i32
    %c1_i32_57 = arith.constant 1 : i32
    %86 = arith.subi %c6_i32, %c1_i32_57 : i32
    %87 = arith.index_cast %86 : i32 to index
    %c0_58 = arith.constant 0 : index
    %c0_59 = arith.constant 0 : index
    %88 = vector.load %arg8[%87, %c0_58, %c0_59] : memref<16x16x128xf32, #tpu.memory_space<vmem>>, vector<1x16x128xf32>
    %89 = vector.shape_cast %88 : vector<1x16x128xf32> to vector<16x128xf32>
    %90 = arith.index_cast %c6_i32 : i32 to index
    %c0_60 = arith.constant 0 : index
    %c0_61 = arith.constant 0 : index
    %91 = vector.load %arg8[%90, %c0_60, %c0_61] : memref<16x16x128xf32, #tpu.memory_space<vmem>>, vector<1x16x128xf32>
    %92 = vector.shape_cast %91 : vector<1x16x128xf32> to vector<16x128xf32>
    %cst_62 = arith.constant dense<0.000000e+00> : vector<16x128xf32>
    %93 = tpu.matmul %89, %9, %cst_62 {dimension_numbers = #tpu.dot_dimension_numbers<[1], [0], [0], [1], [0, 0, 1, 1], [], []>} : vector<16x128xf32>, vector<128x128xf32>, vector<16x128xf32> -> vector<16x128xf32>
    %94 = arith.addf %92, %93 : vector<16x128xf32>
    %95 = math.tanh %94 : vector<16x128xf32>
    %96 = arith.index_cast %c6_i32 : i32 to index
    %c0_63 = arith.constant 0 : index
    %c0_64 = arith.constant 0 : index
    %97 = vector.load %arg8[%96, %c0_63, %c0_64] : memref<16x16x128xf32, #tpu.memory_space<vmem>>, vector<1x16x128xf32>
    %98 = vector.shape_cast %97 : vector<1x16x128xf32> to vector<16x128xf32>
    %99 = vector.shape_cast %95 : vector<16x128xf32> to vector<1x16x128xf32>
    tpu.vector_store %arg8[%96, %c0_63, %c0_64], %99 {strides = array<i32>} : memref<16x16x128xf32, #tpu.memory_space<vmem>>, vector<1x16x128xf32>,
    %c7_i32 = arith.constant 7 : i32
    %c1_i32_65 = arith.constant 1 : i32
    %100 = arith.subi %c7_i32, %c1_i32_65 : i32
    %101 = arith.index_cast %100 : i32 to index
    %c0_66 = arith.constant 0 : index
    %c0_67 = arith.constant 0 : index
    %102 = vector.load %arg8[%101, %c0_66, %c0_67] : memref<16x16x128xf32, #tpu.memory_space<vmem>>, vector<1x16x128xf32>
    %103 = vector.shape_cast %102 : vector<1x16x128xf32> to vector<16x128xf32>
    %104 = arith.index_cast %c7_i32 : i32 to index
    %c0_68 = arith.constant 0 : index
    %c0_69 = arith.constant 0 : index
    %105 = vector.load %arg8[%104, %c0_68, %c0_69] : memref<16x16x128xf32, #tpu.memory_space<vmem>>, vector<1x16x128xf32>
    %106 = vector.shape_cast %105 : vector<1x16x128xf32> to vector<16x128xf32>
    %cst_70 = arith.constant dense<0.000000e+00> : vector<16x128xf32>
    %107 = tpu.matmul %103, %9, %cst_70 {dimension_numbers = #tpu.dot_dimension_numbers<[1], [0], [0], [1], [0, 0, 1, 1], [], []>} : vector<16x128xf32>, vector<128x128xf32>, vector<16x128xf32> -> vector<16x128xf32>
    %108 = arith.addf %106, %107 : vector<16x128xf32>
    %109 = math.tanh %108 : vector<16x128xf32>
    %110 = arith.index_cast %c7_i32 : i32 to index
    %c0_71 = arith.constant 0 : index
    %c0_72 = arith.constant 0 : index
    %111 = vector.load %arg8[%110, %c0_71, %c0_72] : memref<16x16x128xf32, #tpu.memory_space<vmem>>, vector<1x16x128xf32>
    %112 = vector.shape_cast %111 : vector<1x16x128xf32> to vector<16x128xf32>
    %113 = vector.shape_cast %109 : vector<16x128xf32> to vector<1x16x128xf32>
    tpu.vector_store %arg8[%110, %c0_71, %c0_72], %113 {strides = array<i32>} : memref<16x16x128xf32, #tpu.memory_space<vmem>>, vector<1x16x128xf32>,
    %c8_i32 = arith.constant 8 : i32
    %c1_i32_73 = arith.constant 1 : i32
    %114 = arith.subi %c8_i32, %c1_i32_73 : i32
    %115 = arith.index_cast %114 : i32 to index
    %c0_74 = arith.constant 0 : index
    %c0_75 = arith.constant 0 : index
    %116 = vector.load %arg8[%115, %c0_74, %c0_75] : memref<16x16x128xf32, #tpu.memory_space<vmem>>, vector<1x16x128xf32>
    %117 = vector.shape_cast %116 : vector<1x16x128xf32> to vector<16x128xf32>
    %118 = arith.index_cast %c8_i32 : i32 to index
    %c0_76 = arith.constant 0 : index
    %c0_77 = arith.constant 0 : index
    %119 = vector.load %arg8[%118, %c0_76, %c0_77] : memref<16x16x128xf32, #tpu.memory_space<vmem>>, vector<1x16x128xf32>
    %120 = vector.shape_cast %119 : vector<1x16x128xf32> to vector<16x128xf32>
    %cst_78 = arith.constant dense<0.000000e+00> : vector<16x128xf32>
    %121 = tpu.matmul %117, %9, %cst_78 {dimension_numbers = #tpu.dot_dimension_numbers<[1], [0], [0], [1], [0, 0, 1, 1], [], []>} : vector<16x128xf32>, vector<128x128xf32>, vector<16x128xf32> -> vector<16x128xf32>
    %122 = arith.addf %120, %121 : vector<16x128xf32>
    %123 = math.tanh %122 : vector<16x128xf32>
    %124 = arith.index_cast %c8_i32 : i32 to index
    %c0_79 = arith.constant 0 : index
    %c0_80 = arith.constant 0 : index
    %125 = vector.load %arg8[%124, %c0_79, %c0_80] : memref<16x16x128xf32, #tpu.memory_space<vmem>>, vector<1x16x128xf32>
    %126 = vector.shape_cast %125 : vector<1x16x128xf32> to vector<16x128xf32>
    %127 = vector.shape_cast %123 : vector<16x128xf32> to vector<1x16x128xf32>
    tpu.vector_store %arg8[%124, %c0_79, %c0_80], %127 {strides = array<i32>} : memref<16x16x128xf32, #tpu.memory_space<vmem>>, vector<1x16x128xf32>,
    %c9_i32 = arith.constant 9 : i32
    %c1_i32_81 = arith.constant 1 : i32
    %128 = arith.subi %c9_i32, %c1_i32_81 : i32
    %129 = arith.index_cast %128 : i32 to index
    %c0_82 = arith.constant 0 : index
    %c0_83 = arith.constant 0 : index
    %130 = vector.load %arg8[%129, %c0_82, %c0_83] : memref<16x16x128xf32, #tpu.memory_space<vmem>>, vector<1x16x128xf32>
    %131 = vector.shape_cast %130 : vector<1x16x128xf32> to vector<16x128xf32>
    %132 = arith.index_cast %c9_i32 : i32 to index
    %c0_84 = arith.constant 0 : index
    %c0_85 = arith.constant 0 : index
    %133 = vector.load %arg8[%132, %c0_84, %c0_85] : memref<16x16x128xf32, #tpu.memory_space<vmem>>, vector<1x16x128xf32>
    %134 = vector.shape_cast %133 : vector<1x16x128xf32> to vector<16x128xf32>
    %cst_86 = arith.constant dense<0.000000e+00> : vector<16x128xf32>
    %135 = tpu.matmul %131, %9, %cst_86 {dimension_numbers = #tpu.dot_dimension_numbers<[1], [0], [0], [1], [0, 0, 1, 1], [], []>} : vector<16x128xf32>, vector<128x128xf32>, vector<16x128xf32> -> vector<16x128xf32>
    %136 = arith.addf %134, %135 : vector<16x128xf32>
    %137 = math.tanh %136 : vector<16x128xf32>
    %138 = arith.index_cast %c9_i32 : i32 to index
    %c0_87 = arith.constant 0 : index
    %c0_88 = arith.constant 0 : index
    %139 = vector.load %arg8[%138, %c0_87, %c0_88] : memref<16x16x128xf32, #tpu.memory_space<vmem>>, vector<1x16x128xf32>
    %140 = vector.shape_cast %139 : vector<1x16x128xf32> to vector<16x128xf32>
    %141 = vector.shape_cast %137 : vector<16x128xf32> to vector<1x16x128xf32>
    tpu.vector_store %arg8[%138, %c0_87, %c0_88], %141 {strides = array<i32>} : memref<16x16x128xf32, #tpu.memory_space<vmem>>, vector<1x16x128xf32>,
    %c10_i32 = arith.constant 10 : i32
    %c1_i32_89 = arith.constant 1 : i32
    %142 = arith.subi %c10_i32, %c1_i32_89 : i32
    %143 = arith.index_cast %142 : i32 to index
    %c0_90 = arith.constant 0 : index
    %c0_91 = arith.constant 0 : index
    %144 = vector.load %arg8[%143, %c0_90, %c0_91] : memref<16x16x128xf32, #tpu.memory_space<vmem>>, vector<1x16x128xf32>
    %145 = vector.shape_cast %144 : vector<1x16x128xf32> to vector<16x128xf32>
    %146 = arith.index_cast %c10_i32 : i32 to index
    %c0_92 = arith.constant 0 : index
    %c0_93 = arith.constant 0 : index
    %147 = vector.load %arg8[%146, %c0_92, %c0_93] : memref<16x16x128xf32, #tpu.memory_space<vmem>>, vector<1x16x128xf32>
    %148 = vector.shape_cast %147 : vector<1x16x128xf32> to vector<16x128xf32>
    %cst_94 = arith.constant dense<0.000000e+00> : vector<16x128xf32>
    %149 = tpu.matmul %145, %9, %cst_94 {dimension_numbers = #tpu.dot_dimension_numbers<[1], [0], [0], [1], [0, 0, 1, 1], [], []>} : vector<16x128xf32>, vector<128x128xf32>, vector<16x128xf32> -> vector<16x128xf32>
    %150 = arith.addf %148, %149 : vector<16x128xf32>
    %151 = math.tanh %150 : vector<16x128xf32>
    %152 = arith.index_cast %c10_i32 : i32 to index
    %c0_95 = arith.constant 0 : index
    %c0_96 = arith.constant 0 : index
    %153 = vector.load %arg8[%152, %c0_95, %c0_96] : memref<16x16x128xf32, #tpu.memory_space<vmem>>, vector<1x16x128xf32>
    %154 = vector.shape_cast %153 : vector<1x16x128xf32> to vector<16x128xf32>
    %155 = vector.shape_cast %151 : vector<16x128xf32> to vector<1x16x128xf32>
    tpu.vector_store %arg8[%152, %c0_95, %c0_96], %155 {strides = array<i32>} : memref<16x16x128xf32, #tpu.memory_space<vmem>>, vector<1x16x128xf32>,
    %c11_i32 = arith.constant 11 : i32
    %c1_i32_97 = arith.constant 1 : i32
    %156 = arith.subi %c11_i32, %c1_i32_97 : i32
    %157 = arith.index_cast %156 : i32 to index
    %c0_98 = arith.constant 0 : index
    %c0_99 = arith.constant 0 : index
    %158 = vector.load %arg8[%157, %c0_98, %c0_99] : memref<16x16x128xf32, #tpu.memory_space<vmem>>, vector<1x16x128xf32>
    %159 = vector.shape_cast %158 : vector<1x16x128xf32> to vector<16x128xf32>
    %160 = arith.index_cast %c11_i32 : i32 to index
    %c0_100 = arith.constant 0 : index
    %c0_101 = arith.constant 0 : index
    %161 = vector.load %arg8[%160, %c0_100, %c0_101] : memref<16x16x128xf32, #tpu.memory_space<vmem>>, vector<1x16x128xf32>
    %162 = vector.shape_cast %161 : vector<1x16x128xf32> to vector<16x128xf32>
    %cst_102 = arith.constant dense<0.000000e+00> : vector<16x128xf32>
    %163 = tpu.matmul %159, %9, %cst_102 {dimension_numbers = #tpu.dot_dimension_numbers<[1], [0], [0], [1], [0, 0, 1, 1], [], []>} : vector<16x128xf32>, vector<128x128xf32>, vector<16x128xf32> -> vector<16x128xf32>
    %164 = arith.addf %162, %163 : vector<16x128xf32>
    %165 = math.tanh %164 : vector<16x128xf32>
    %166 = arith.index_cast %c11_i32 : i32 to index
    %c0_103 = arith.constant 0 : index
    %c0_104 = arith.constant 0 : index
    %167 = vector.load %arg8[%166, %c0_103, %c0_104] : memref<16x16x128xf32, #tpu.memory_space<vmem>>, vector<1x16x128xf32>
    %168 = vector.shape_cast %167 : vector<1x16x128xf32> to vector<16x128xf32>
    %169 = vector.shape_cast %165 : vector<16x128xf32> to vector<1x16x128xf32>
    tpu.vector_store %arg8[%166, %c0_103, %c0_104], %169 {strides = array<i32>} : memref<16x16x128xf32, #tpu.memory_space<vmem>>, vector<1x16x128xf32>,
    %c12_i32 = arith.constant 12 : i32
    %c1_i32_105 = arith.constant 1 : i32
    %170 = arith.subi %c12_i32, %c1_i32_105 : i32
    %171 = arith.index_cast %170 : i32 to index
    %c0_106 = arith.constant 0 : index
    %c0_107 = arith.constant 0 : index
    %172 = vector.load %arg8[%171, %c0_106, %c0_107] : memref<16x16x128xf32, #tpu.memory_space<vmem>>, vector<1x16x128xf32>
    %173 = vector.shape_cast %172 : vector<1x16x128xf32> to vector<16x128xf32>
    %174 = arith.index_cast %c12_i32 : i32 to index
    %c0_108 = arith.constant 0 : index
    %c0_109 = arith.constant 0 : index
    %175 = vector.load %arg8[%174, %c0_108, %c0_109] : memref<16x16x128xf32, #tpu.memory_space<vmem>>, vector<1x16x128xf32>
    %176 = vector.shape_cast %175 : vector<1x16x128xf32> to vector<16x128xf32>
    %cst_110 = arith.constant dense<0.000000e+00> : vector<16x128xf32>
    %177 = tpu.matmul %173, %9, %cst_110 {dimension_numbers = #tpu.dot_dimension_numbers<[1], [0], [0], [1], [0, 0, 1, 1], [], []>} : vector<16x128xf32>, vector<128x128xf32>, vector<16x128xf32> -> vector<16x128xf32>
    %178 = arith.addf %176, %177 : vector<16x128xf32>
    %179 = math.tanh %178 : vector<16x128xf32>
    %180 = arith.index_cast %c12_i32 : i32 to index
    %c0_111 = arith.constant 0 : index
    %c0_112 = arith.constant 0 : index
    %181 = vector.load %arg8[%180, %c0_111, %c0_112] : memref<16x16x128xf32, #tpu.memory_space<vmem>>, vector<1x16x128xf32>
    %182 = vector.shape_cast %181 : vector<1x16x128xf32> to vector<16x128xf32>
    %183 = vector.shape_cast %179 : vector<16x128xf32> to vector<1x16x128xf32>
    tpu.vector_store %arg8[%180, %c0_111, %c0_112], %183 {strides = array<i32>} : memref<16x16x128xf32, #tpu.memory_space<vmem>>, vector<1x16x128xf32>,
    %c13_i32 = arith.constant 13 : i32
    %c1_i32_113 = arith.constant 1 : i32
    %184 = arith.subi %c13_i32, %c1_i32_113 : i32
    %185 = arith.index_cast %184 : i32 to index
    %c0_114 = arith.constant 0 : index
    %c0_115 = arith.constant 0 : index
    %186 = vector.load %arg8[%185, %c0_114, %c0_115] : memref<16x16x128xf32, #tpu.memory_space<vmem>>, vector<1x16x128xf32>
    %187 = vector.shape_cast %186 : vector<1x16x128xf32> to vector<16x128xf32>
    %188 = arith.index_cast %c13_i32 : i32 to index
    %c0_116 = arith.constant 0 : index
    %c0_117 = arith.constant 0 : index
    %189 = vector.load %arg8[%188, %c0_116, %c0_117] : memref<16x16x128xf32, #tpu.memory_space<vmem>>, vector<1x16x128xf32>
    %190 = vector.shape_cast %189 : vector<1x16x128xf32> to vector<16x128xf32>
    %cst_118 = arith.constant dense<0.000000e+00> : vector<16x128xf32>
    %191 = tpu.matmul %187, %9, %cst_118 {dimension_numbers = #tpu.dot_dimension_numbers<[1], [0], [0], [1], [0, 0, 1, 1], [], []>} : vector<16x128xf32>, vector<128x128xf32>, vector<16x128xf32> -> vector<16x128xf32>
    %192 = arith.addf %190, %191 : vector<16x128xf32>
    %193 = math.tanh %192 : vector<16x128xf32>
    %194 = arith.index_cast %c13_i32 : i32 to index
    %c0_119 = arith.constant 0 : index
    %c0_120 = arith.constant 0 : index
    %195 = vector.load %arg8[%194, %c0_119, %c0_120] : memref<16x16x128xf32, #tpu.memory_space<vmem>>, vector<1x16x128xf32>
    %196 = vector.shape_cast %195 : vector<1x16x128xf32> to vector<16x128xf32>
    %197 = vector.shape_cast %193 : vector<16x128xf32> to vector<1x16x128xf32>
    tpu.vector_store %arg8[%194, %c0_119, %c0_120], %197 {strides = array<i32>} : memref<16x16x128xf32, #tpu.memory_space<vmem>>, vector<1x16x128xf32>,
    %c14_i32 = arith.constant 14 : i32
    %c1_i32_121 = arith.constant 1 : i32
    %198 = arith.subi %c14_i32, %c1_i32_121 : i32
    %199 = arith.index_cast %198 : i32 to index
    %c0_122 = arith.constant 0 : index
    %c0_123 = arith.constant 0 : index
    %200 = vector.load %arg8[%199, %c0_122, %c0_123] : memref<16x16x128xf32, #tpu.memory_space<vmem>>, vector<1x16x128xf32>
    %201 = vector.shape_cast %200 : vector<1x16x128xf32> to vector<16x128xf32>
    %202 = arith.index_cast %c14_i32 : i32 to index
    %c0_124 = arith.constant 0 : index
    %c0_125 = arith.constant 0 : index
    %203 = vector.load %arg8[%202, %c0_124, %c0_125] : memref<16x16x128xf32, #tpu.memory_space<vmem>>, vector<1x16x128xf32>
    %204 = vector.shape_cast %203 : vector<1x16x128xf32> to vector<16x128xf32>
    %cst_126 = arith.constant dense<0.000000e+00> : vector<16x128xf32>
    %205 = tpu.matmul %201, %9, %cst_126 {dimension_numbers = #tpu.dot_dimension_numbers<[1], [0], [0], [1], [0, 0, 1, 1], [], []>} : vector<16x128xf32>, vector<128x128xf32>, vector<16x128xf32> -> vector<16x128xf32>
    %206 = arith.addf %204, %205 : vector<16x128xf32>
    %207 = math.tanh %206 : vector<16x128xf32>
    %208 = arith.index_cast %c14_i32 : i32 to index
    %c0_127 = arith.constant 0 : index
    %c0_128 = arith.constant 0 : index
    %209 = vector.load %arg8[%208, %c0_127, %c0_128] : memref<16x16x128xf32, #tpu.memory_space<vmem>>, vector<1x16x128xf32>
    %210 = vector.shape_cast %209 : vector<1x16x128xf32> to vector<16x128xf32>
    %211 = vector.shape_cast %207 : vector<16x128xf32> to vector<1x16x128xf32>
    tpu.vector_store %arg8[%208, %c0_127, %c0_128], %211 {strides = array<i32>} : memref<16x16x128xf32, #tpu.memory_space<vmem>>, vector<1x16x128xf32>,
    %c15_i32 = arith.constant 15 : i32
    %c1_i32_129 = arith.constant 1 : i32
    %212 = arith.subi %c15_i32, %c1_i32_129 : i32
    %213 = arith.index_cast %212 : i32 to index
    %c0_130 = arith.constant 0 : index
    %c0_131 = arith.constant 0 : index
    %214 = vector.load %arg8[%213, %c0_130, %c0_131] : memref<16x16x128xf32, #tpu.memory_space<vmem>>, vector<1x16x128xf32>
    %215 = vector.shape_cast %214 : vector<1x16x128xf32> to vector<16x128xf32>
    %216 = arith.index_cast %c15_i32 : i32 to index
    %c0_132 = arith.constant 0 : index
    %c0_133 = arith.constant 0 : index
    %217 = vector.load %arg8[%216, %c0_132, %c0_133] : memref<16x16x128xf32, #tpu.memory_space<vmem>>, vector<1x16x128xf32>
    %218 = vector.shape_cast %217 : vector<1x16x128xf32> to vector<16x128xf32>
    %cst_134 = arith.constant dense<0.000000e+00> : vector<16x128xf32>
    %219 = tpu.matmul %215, %9, %cst_134 {dimension_numbers = #tpu.dot_dimension_numbers<[1], [0], [0], [1], [0, 0, 1, 1], [], []>} : vector<16x128xf32>, vector<128x128xf32>, vector<16x128xf32> -> vector<16x128xf32>
    %220 = arith.addf %218, %219 : vector<16x128xf32>
    %221 = math.tanh %220 : vector<16x128xf32>
    %222 = arith.index_cast %c15_i32 : i32 to index
    %c0_135 = arith.constant 0 : index
    %c0_136 = arith.constant 0 : index
    %223 = vector.load %arg8[%222, %c0_135, %c0_136] : memref<16x16x128xf32, #tpu.memory_space<vmem>>, vector<1x16x128xf32>
    %224 = vector.shape_cast %223 : vector<1x16x128xf32> to vector<16x128xf32>
    %225 = vector.shape_cast %221 : vector<16x128xf32> to vector<1x16x128xf32>
    tpu.vector_store %arg8[%222, %c0_135, %c0_136], %225 {strides = array<i32>} : memref<16x16x128xf32, #tpu.memory_space<vmem>>, vector<1x16x128xf32>,
    %c15_i32_137 = arith.constant 15 : i32
    %c0_138 = arith.constant 0 : index
    %c0_139 = arith.constant 0 : index
    %c0_140 = arith.constant 0 : index
    %226 = vector.load %arg8[%c0_138, %c0_139, %c0_140] : memref<16x16x128xf32, #tpu.memory_space<vmem>>, vector<16x16x128xf32>
    %227 = vector.shape_cast %226 : vector<16x16x128xf32> to vector<256x128xf32>
    %c0_141 = arith.constant 0 : index
    %c0_142 = arith.constant 0 : index
    %228 = vector.load %arg5[%c0_141, %c0_142] : memref<128x128xf32, #tpu.memory_space<vmem>>, vector<128x128xf32>
    %cst_143 = arith.constant dense<0.000000e+00> : vector<256x128xf32>
    %229 = tpu.matmul %227, %228, %cst_143 {dimension_numbers = #tpu.dot_dimension_numbers<[1], [0], [0], [1], [0, 0, 1, 1], [], []>} : vector<256x128xf32>, vector<128x128xf32>, vector<256x128xf32> -> vector<256x128xf32>
    %c0_144 = arith.constant 0 : index
    %c0_145 = arith.constant 0 : index
    %230 = vector.load %arg6[%c0_144, %c0_145] : memref<1x128xf32, #tpu.memory_space<vmem>>, vector<1x128xf32>
    %231 = vector.broadcast %230 : vector<1x128xf32> to vector<256x128xf32>
    %232 = arith.addf %229, %231 : vector<256x128xf32>
    %233 = vector.shape_cast %232 : vector<256x128xf32> to vector<16x16x128xf32>
    %c0_146 = arith.constant 0 : index
    %c0_147 = arith.constant 0 : index
    %c0_148 = arith.constant 0 : index
    %234 = vector.load %arg7[%c0_146, %c0_147, %c0_148] : memref<16x16x128xf32, #tpu.memory_space<vmem>>, vector<16x16x128xf32>
    tpu.vector_store %arg7[%c0_146, %c0_147, %c0_148], %233 {strides = array<i32>} : memref<16x16x128xf32, #tpu.memory_space<vmem>>, vector<16x16x128xf32>,
    return
  }
  func.func @transform_0(%arg0: i32) -> (i32, i32, i32) {
    %c0_i32 = arith.constant 0 : i32
    %c0_i32_0 = arith.constant 0 : i32
    %c0_i32_1 = arith.constant 0 : i32
    return %c0_i32, %arg0, %c0_i32_0 : i32, i32, i32
  }
  func.func @transform_1(%arg0: i32) -> (i32, i32) {
    %c0_i32 = arith.constant 0 : i32
    %c0_i32_0 = arith.constant 0 : i32
    %c0_i32_1 = arith.constant 0 : i32
    return %c0_i32, %c0_i32_0 : i32, i32
  }
  func.func @transform_2(%arg0: i32) -> (i32, i32) {
    %c0_i32 = arith.constant 0 : i32
    %c0_i32_0 = arith.constant 0 : i32
    %c0_i32_1 = arith.constant 0 : i32
    return %c0_i32, %c0_i32_0 : i32, i32
  }
  func.func @transform_3(%arg0: i32) -> (i32, i32) {
    %c0_i32 = arith.constant 0 : i32
    %c0_i32_0 = arith.constant 0 : i32
    %c0_i32_1 = arith.constant 0 : i32
    return %c0_i32, %c0_i32_0 : i32, i32
  }
  func.func @transform_4(%arg0: i32) -> (i32, i32) {
    %c0_i32 = arith.constant 0 : i32
    %c0_i32_0 = arith.constant 0 : i32
    %c0_i32_1 = arith.constant 0 : i32
    return %c0_i32, %c0_i32_0 : i32, i32
  }
  func.func @transform_5(%arg0: i32) -> (i32, i32) {
    %c0_i32 = arith.constant 0 : i32
    %c0_i32_0 = arith.constant 0 : i32
    %c0_i32_1 = arith.constant 0 : i32
    return %c0_i32, %c0_i32_0 : i32, i32
  }
  func.func @transform_6(%arg0: i32) -> (i32, i32, i32) {
    %c0_i32 = arith.constant 0 : i32
    %c0_i32_0 = arith.constant 0 : i32
    %c0_i32_1 = arith.constant 0 : i32
    return %c0_i32, %arg0, %c0_i32_0 : i32, i32, i32
  }
}

</mosaic_0001>

<bundles_post_ra>
// kernel: tpu_custom_call.1
= control target key start
LH: loop header
LB: loop body
LE: loop exit
PB: predicated region body
PF: predicated region fallthrough
CT: control target
= control target key end

     0   :  { %11 = vsyncpa [#allocation4], 0  ;;  %s4433_s0 = inlined_call_operand.hbm [shape: f32[16,16,128], index: 0, kind: input, shape index: {}]   ;;  %s4434_s1 = inlined_call_operand.hbm [shape: f32[128,128], index: 1, kind: input, shape index: {}]   ;;  %s4435_s2 = inlined_call_operand.vmem [shape: f32[1,128], index: 2, kind: input, shape index: {}]   ;;  %s4436_s3 = inlined_call_operand.hbm [shape: f32[128,128], index: 3, kind: input, shape index: {}]   ;;  %s4437_s4 = inlined_call_operand.hbm [shape: f32[128,128], index: 4, kind: input, shape index: {}]   ;;  %s4438_s5 = inlined_call_operand.vmem [shape: f32[1,128], index: 5, kind: input, shape index: {}]   ;;  %s4439_s6 = inlined_call_operand.hbm [shape: f32[16,16,128], index: 6, kind: output, shape index: {}]  }
   0x1   :  { %12 = vsyncpa [#allocation7], 0 }
   0x2   :  { %13 = vsyncpa [#allocation10], 0 }
   0x3   :  { %14 = vsyncpa [#allocation5], 0  ;;  %s3881_s21 = smov [#allocation6]   ;;  %s3882_s23 = smov [#allocation3]  }
   0x4   :  { %s32_s22 = sshll.u32 %s3881_s21, 4  ;;  %s20_s24 = sshll.u32 %s3882_s23, 4  ;;  %s33_s22 = int_to_ptr.vmem [resolvable:$true] %s32_s22  ;;  %s3923_s24 = int_to_ptr.vmem [resolvable:$true] %s20_s24 }
   0x5   :  { %s3763_s27 = scalar_lea.hbm %s4434_s1, 2048 }
   0x6   :  { %p3764_p0 = scmp.ne.s32.totalorder %s4434_s1, %s3763_s27  ;;  %p3767_p1 = scmp.lt.u32.totalorder %s3763_s27, %s4434_s1 }
   0x8   :  { %p3769_p2 = pnand %p3767_p1, %p3764_p0 }
   0xa   :  { %3772 = shalt.err (!%p3769_p2)
}
   0xb   :  { %s3773_s8 = scalar_lea.vmem %s33_s22, 2048  ;;  %p3778_p4 = scmp.lt.s32.totalorder %s33_s22, %s33_s22 }
   0xc   :  { %p3774_p3 = scmp.ne.s32.totalorder %s33_s22, %s3773_s8  ;;  %p3779_p5 = scmp.lt.s32.totalorder %s3773_s8, %s3773_s8 }
   0xe   :  { %p3780_p6 = por %p3779_p5, %p3778_p4 }
  0x10   :  { %p3781_p7 = pnand %p3780_p6, %p3774_p3 }
  0x12   :  { %3784 = shalt.err (!%p3781_p7)
}
  0x13   :  { %s3883_s9 = smov 128   ;;  %s3884_s10 = smov 8  }
  0x14   :  { %38 = dma.hbm_to_vmem [thread:$0]  %s4434_s1, 2048, %s33_s22, [#allocation7], %s3883_s9, %s3883_s9, %s3884_s10  }
  0x15   :  { %s3785_s15 = scalar_lea.hbm %s4433_s0, 4096 }
  0x16   :  { %p3786_p8 = scmp.ne.s32.totalorder %s4433_s0, %s3785_s15  ;;  %p3789_p9 = scmp.lt.u32.totalorder %s3785_s15, %s4433_s0 }
  0x18   :  { %p3791_p10 = pnand %p3789_p9, %p3786_p8 }
  0x1a   :  { %3794 = shalt.err (!%p3791_p10)
}
  0x1b   :  { %s3795_s20 = scalar_lea.vmem %s3923_s24, 4096  ;;  %p3800_p12 = scmp.lt.s32.totalorder %s3923_s24, %s3923_s24 }
  0x1c   :  { %p3796_p11 = scmp.ne.s32.totalorder %s3923_s24, %s3795_s20  ;;  %p3801_p13 = scmp.lt.s32.totalorder %s3795_s20, %s3795_s20 }
  0x1e   :  { %p3802_p0 = por %p3801_p13, %p3800_p12 }
  0x20   :  { %p3803_p1 = pnand %p3802_p0, %p3796_p11 }
  0x22   :  { %3806 = shalt.err (!%p3803_p1)
}
  0x23   :  { %26 = dma.hbm_to_vmem [thread:$0]  %s4433_s0, 4096, %s3923_s24, [#allocation4], %s3883_s9, %s3883_s9, %s3884_s10  }
  0x24   :  { %s3885_s22 = smov [#allocation8]   ;;  %s3886_s25 = smov [#allocation9]  }
  0x25   :  { %s46_s23 = sshll.u32 %s3885_s22, 4  ;;  %s58_s26 = sshll.u32 %s3886_s25, 4  ;;  %s47_s23 = int_to_ptr.vmem [resolvable:$true] %s46_s23  ;;  %s3960_s26 = int_to_ptr.vmem [resolvable:$true] %s58_s26 }
  0x26   :  { %s3807_s29 = scalar_lea.hbm %s4436_s3, 2048 }
  0x27   :  { %p3808_p2 = scmp.ne.s32.totalorder %s4436_s3, %s3807_s29  ;;  %p3811_p3 = scmp.lt.u32.totalorder %s3807_s29, %s4436_s3 }
  0x29   :  { %p3813_p4 = pnand %p3811_p3, %p3808_p2 }
  0x2b   :  { %3816 = shalt.err (!%p3813_p4)
}
  0x2c   :  { %s3817_s0 = scalar_lea.vmem %s47_s23, 2048  ;;  %p3822_p6 = scmp.lt.s32.totalorder %s47_s23, %s47_s23 }
  0x2d   :  { %p3818_p5 = scmp.ne.s32.totalorder %s47_s23, %s3817_s0  ;;  %p3823_p7 = scmp.lt.s32.totalorder %s3817_s0, %s3817_s0 }
  0x2f   :  { %p3824_p8 = por %p3823_p7, %p3822_p6 }
  0x31   :  { %p3825_p9 = pnand %p3824_p8, %p3818_p5 }
  0x33   :  { %3828 = shalt.err (!%p3825_p9)
}
  0x34   :  { %52 = dma.hbm_to_vmem [thread:$0]  %s4436_s3, 2048, %s47_s23, [#allocation7], %s3883_s9, %s3883_s9, %s3884_s10  }
  0x35   :  { %s3829_s15 = scalar_lea.hbm %s4437_s4, 2048 }
  0x36   :  { %p3830_p10 = scmp.ne.s32.totalorder %s4437_s4, %s3829_s15  ;;  %p3833_p11 = scmp.lt.u32.totalorder %s3829_s15, %s4437_s4 }
  0x38   :  { %p3835_p12 = pnand %p3833_p11, %p3830_p10 }
  0x3a   :  { %3838 = shalt.err (!%p3835_p12)
}
  0x3b   :  { %s3839_s20 = scalar_lea.vmem %s3960_s26, 2048  ;;  %p3844_p0 = scmp.lt.s32.totalorder %s3960_s26, %s3960_s26 }
  0x3c   :  { %p3840_p13 = scmp.ne.s32.totalorder %s3960_s26, %s3839_s20  ;;  %p3845_p1 = scmp.lt.s32.totalorder %s3839_s20, %s3839_s20 }
  0x3e   :  { %p3846_p2 = por %p3845_p1, %p3844_p0 }
  0x40   :  { %p3847_p3 = pnand %p3846_p2, %p3840_p13 }
  0x42   :  { %3850 = shalt.err (!%p3847_p3)
}
  0x43   :  { %64 = dma.hbm_to_vmem [thread:$0]  %s4437_s4, 2048, %s3960_s26, [#allocation10], %s3883_s9, %s3883_s9, %s3884_s10  }
  0x44   :  { %3873 = dma.done.wait [#allocation4], 4096  }
  0x45   :  { %3874 = vsyncadd [#allocation4], 4294963200 }
  0x46   :  { %3875 = dma.done.wait [#allocation7], 4096  }
  0x47   :  { %3876 = vsyncadd [#allocation7], 4294963200 }
  0x48   :  { %3877 = dma.done.wait [#allocation10], 2048  }
  0x49   :  { %3878 = vsyncadd [#allocation10], 4294965248  ;;  %v111_v0 = vld [vmem:[#allocation6] sm:$0xff]  ;;  %v112_v1 = vld [vmem:[#allocation6 + $0x8] sm:$0xff] }
  0x4a   :  { %v113_v2 = vld [vmem:[#allocation6 + $0x10] sm:$0xff]  ;;  %v3087_v3 = vpack.c.bf16 %v112_v1, %v111_v0  ;;  %v114_v4 = vld [vmem:[#allocation6 + $0x18] sm:$0xff]  ;;  %v115_v6 = vld [vmem:[#allocation6 + $0x20] sm:$0xff] }
  0x4b   :  { %v3091_v5 = vpack.c.bf16 %v114_v4, %v113_v2  ;;  %v116_v7 = vld [vmem:[#allocation6 + $0x28] sm:$0xff]  ;;  %v117_v9 = vld [vmem:[#allocation6 + $0x30] sm:$0xff]  ;;  %v79_v10 = vld [vmem:[#allocation3] sm:$0xff] }
  0x4c   :  { %3088 = vmatprep.subr.bf16.mxu1 %v3087_v3  ;;  %v3095_v8 = vpack.c.bf16 %v116_v7, %v115_v6  ;;  %v118_v11 = vld [vmem:[#allocation6 + $0x38] sm:$0xff]  ;;  %2434 = vmatprep.mubr.f32.mxu1 %v79_v10  ;;  %v391_v12 = vld [vmem:[#allocation8] sm:$0xff]  ;;  %v392_v13 = vld [vmem:[#allocation8 + $0x8] sm:$0xff] }
  0x4d   :  { %3090 = vmatpush3.bf16.msra.mxu1 %v3087_v3  ;;  %v3997_v14 = vpack.c.bf16 %v392_v13, %v391_v12  ;;  %v393_v15 = vld [vmem:[#allocation8 + $0x10] sm:$0xff]  ;;  %v394_v16 = vld [vmem:[#allocation8 + $0x18] sm:$0xff]  ;;  %v3099_v17 = vpack.c.bf16 %v118_v11, %v117_v9  ;;  %v119_v18 = vld [vmem:[#allocation6 + $0x40] sm:$0xff] }
  0x4e   :  { %3092 = vmatprep.subr.bf16.mxu1 %v3091_v5  ;;  %v3999_v19 = vpack.c.bf16 %v394_v16, %v393_v15  ;;  %v120_v20 = vld [vmem:[#allocation6 + $0x48] sm:$0xff]  ;;  %v395_v21 = vld [vmem:[#allocation8 + $0x20] sm:$0xff]  ;;  %v121_v24 = vld [vmem:[#allocation6 + $0x50] sm:$0xff] }
  0x4f   :  { %3280 = vmatprep.subr.bf16.mxu0 %v3997_v14  ;;  %v396_v22 = vld [vmem:[#allocation8 + $0x28] sm:$0xff]  ;;  %v3103_v23 = vpack.c.bf16 %v120_v20, %v119_v18  ;;  %v122_v26 = vld [vmem:[#allocation6 + $0x58] sm:$0xff]  ;;  %v397_v27 = vld [vmem:[#allocation8 + $0x30] sm:$0xff] }
  0x50   :  { %3282 = vmatpush3.bf16.msra.mxu0 %v3997_v14  ;;  %v4004_v25 = vpack.c.bf16 %v396_v22, %v395_v21  ;;  %v398_v28 = vld [vmem:[#allocation8 + $0x38] sm:$0xff]  ;;  %v3107_v29 = vpack.c.bf16 %v122_v26, %v121_v24  ;;  %v123_v30 = vld [vmem:[#allocation6 + $0x60] sm:$0xff]  ;;  %v124_v32 = vld [vmem:[#allocation6 + $0x68] sm:$0xff] }
  0x51   :  { %3094 = vmatpush3.bf16.msra.mxu1 %v3091_v5  ;;  %3284 = vmatprep.subr.bf16.mxu0 %v3999_v19  ;;  %v4008_v31 = vpack.c.bf16 %v398_v28, %v397_v27  ;;  %v399_v33 = vld [vmem:[#allocation8 + $0x40] sm:$0xff]  ;;  %v400_v34 = vld [vmem:[#allocation8 + $0x48] sm:$0xff]  ;;  %v3111_v35 = vpack.c.bf16 %v124_v32, %v123_v30  ;;  %v125_v36 = vld [vmem:[#allocation6 + $0x70] sm:$0xff] }
  0x52   :  { %3096 = vmatprep.subr.bf16.mxu1 %v3095_v8  ;;  %v4012_v37 = vpack.c.bf16 %v400_v34, %v399_v33  ;;  %v126_v38 = vld [vmem:[#allocation6 + $0x78] sm:$0xff]  ;;  %v401_v39 = vld [vmem:[#allocation8 + $0x50] sm:$0xff]  ;;  %v403_v43 = vld [vmem:[#allocation8 + $0x60] sm:$0xff] }
  0x53   :  { %v402_v40 = vld [vmem:[#allocation8 + $0x58] sm:$0xff]  ;;  %v3115_v41 = vpack.c.bf16 %v126_v38, %v125_v36  ;;  %v404_v44 = vld [vmem:[#allocation8 + $0x68] sm:$0xff]  ;;  %v81_v47 = vld [vmem:[#allocation3 + $0x10] sm:$0xff] }
  0x54   :  { %3286 = vmatpush3.bf16.msra.mxu0 %v3999_v19  ;;  %v4016_v42 = vpack.c.bf16 %v402_v40, %v401_v39  ;;  %v4020_v45 = vpack.c.bf16 %v404_v44, %v403_v43  ;;  %v80_v46 = vld [vmem:[#allocation3 + $0x8] sm:$0xff]  ;;  %v82_v48 = vld [vmem:[#allocation3 + $0x18] sm:$0xff]  ;;  %v83_v49 = vld [vmem:[#allocation3 + $0x20] sm:$0xff] }
  0x55   :  { %3098 = vmatpush3.bf16.msra.mxu1 %v3095_v8  ;;  %3288 = vmatprep.subr.bf16.mxu0 %v4004_v25  ;;  %v84_v50 = vld [vmem:[#allocation3 + $0x28] sm:$0xff]  ;;  %v85_v51 = vld [vmem:[#allocation3 + $0x30] sm:$0xff]  ;;  %v86_v52 = vld [vmem:[#allocation3 + $0x38] sm:$0xff] }
  0x56   :  { %3100 = vmatprep.subr.bf16.mxu1 %v3099_v17  ;;  %v87_v53 = vld [vmem:[#allocation3 + $0x40] sm:$0xff]  ;;  %v88_v54 = vld [vmem:[#allocation3 + $0x48] sm:$0xff]  ;;  %v89_v55 = vld [vmem:[#allocation3 + $0x50] sm:$0xff] }
  0x57   :  { %v90_v56 = vld [vmem:[#allocation3 + $0x58] sm:$0xff]  ;;  %v91_v57 = vld [vmem:[#allocation3 + $0x60] sm:$0xff]  ;;  %v92_v58 = vld [vmem:[#allocation3 + $0x68] sm:$0xff] }
  0x58   :  { %3290 = vmatpush3.bf16.msra.mxu0 %v4004_v25  ;;  %v93_v59 = vld [vmem:[#allocation3 + $0x70] sm:$0xff]  ;;  %v94_v60 = vld [vmem:[#allocation3 + $0x78] sm:$0xff]  ;;  %v95_v61 = vld [vmem:[#allocation3 + $0x80] sm:$0xff] }
  0x59   :  { %3102 = vmatpush3.bf16.msra.mxu1 %v3099_v17  ;;  %3292 = vmatprep.subr.bf16.mxu0 %v4008_v31  ;;  %v96_v62 = vld [vmem:[#allocation3 + $0x88] sm:$0xff]  ;;  %v97_v63 = vld [vmem:[#allocation3 + $0x90] sm:$0xff]  ;;  %v98_v0 = vld [vmem:[#allocation3 + $0x98] sm:$0xff] }
  0x5a   :  { %3104 = vmatprep.subr.bf16.mxu1 %v3103_v23  ;;  %v99_v1 = vld [vmem:[#allocation3 + $0xa0] sm:$0xff]  ;;  %v100_v2 = vld [vmem:[#allocation3 + $0xa8] sm:$0xff]  ;;  %v101_v3 = vld [vmem:[#allocation3 + $0xb0] sm:$0xff] }
  0x5b   :  { %v102_v4 = vld [vmem:[#allocation3 + $0xb8] sm:$0xff]  ;;  %v103_v5 = vld [vmem:[#allocation3 + $0xc0] sm:$0xff]  ;;  %v104_v6 = vld [vmem:[#allocation3 + $0xc8] sm:$0xff] }
  0x5c   :  { %3294 = vmatpush3.bf16.msra.mxu0 %v4008_v31  ;;  %v105_v7 = vld [vmem:[#allocation3 + $0xd0] sm:$0xff]  ;;  %v106_v8 = vld [vmem:[#allocation3 + $0xd8] sm:$0xff]  ;;  %v107_v9 = vld [vmem:[#allocation3 + $0xe0] sm:$0xff] }
  0x5d   :  { %3106 = vmatpush3.bf16.msra.mxu1 %v3103_v23  ;;  %3296 = vmatprep.subr.bf16.mxu0 %v4012_v37  ;;  %v108_v10 = vld [vmem:[#allocation3 + $0xe8] sm:$0xff]  ;;  %v405_v11 = vld [vmem:[#allocation8 + $0x70] sm:$0xff]  ;;  %v406_v12 = vld [vmem:[#allocation8 + $0x78] sm:$0xff] }
  0x5e   :  { %3108 = vmatprep.subr.bf16.mxu1 %v3107_v29  ;;  %v109_v13 = vld [vmem:[#allocation3 + $0xf0] sm:$0xff]  ;;  %v4039_v15 = vpack.c.bf16 %v406_v12, %v405_v11  ;;  %v110_v16 = vld [vmem:[#allocation3 + $0xf8] sm:$0xff]  ;;  %v4050_v17 = vld [vmem:[%s4435_s2] ss:$0 sm:$0xff] }
  0x5f   :  { %v1737_v11 = vld [vmem:[#allocation9 + $0x10] sm:$0xff]  ;;  %v1738_v12 = vld [vmem:[#allocation9 + $0x18] sm:$0xff] }
  0x60   :  { %3298 = vmatpush3.bf16.msra.mxu0 %v4012_v37 }
  0x61   :  { %3110 = vmatpush3.bf16.msra.mxu1 %v3107_v29  ;;  %3300 = vmatprep.subr.bf16.mxu0 %v4016_v42 }
  0x62   :  { %3112 = vmatprep.subr.bf16.mxu1 %v3111_v35 }
  0x64   :  { %3302 = vmatpush3.bf16.msra.mxu0 %v4016_v42 }
  0x65   :  { %3114 = vmatpush3.bf16.msra.mxu1 %v3111_v35  ;;  %3304 = vmatprep.subr.bf16.mxu0 %v4020_v45 }
  0x66   :  { %3116 = vmatprep.subr.bf16.mxu1 %v3115_v41 }
  0x68   :  { %3306 = vmatpush3.bf16.msra.mxu0 %v4020_v45 }
  0x69   :  { %3118 = vmatpush3.bf16.msra.mxu1 %v3115_v41  ;;  %3308 = vmatprep.subr.bf16.mxu0 %v4039_v15 }
  0x6a   :  { %3120 = vmatprep.subr.bf16.mxu1 %v3997_v14 }
  0x6c   :  { %2435 = vmatmul.mubr.f32.vlgmr.msra.gmra.mrb[0].mxu1 %v80_v46  ;;  %3310 = vmatpush3.bf16.msra.mxu0 %v4039_v15 }
  0x6d   :  { %3122 = vmatpush3.bf16.msra.mxu1 %v3997_v14  ;;  %2437 = vmatprep.mubr.f32.mxu1 %v81_v47 }
  0x6e   :  { %3124 = vmatprep.subr.bf16.mxu1 %v3999_v19  ;;  %3312 = vmatprep.subr.bf16.mxu0 %v3997_v14 }
  0x70   :  { %2438 = vmatmul.mubr.f32.gmra.mrb[2].mxu1 %v82_v48 }
  0x71   :  { %2440 = vmatprep.mubr.f32.mxu1 %v83_v49  ;;  %3126 = vmatpush3.bf16.msra.mxu1 %v3999_v19 }
  0x72   :  { %3128 = vmatprep.subr.bf16.mxu1 %v4004_v25 }
  0x74   :  { %2441 = vmatmul.mubr.f32.gmra.mrb[4].mxu1 %v84_v50 }
  0x75   :  { %2443 = vmatprep.mubr.f32.mxu1 %v85_v51  ;;  %3130 = vmatpush3.bf16.msra.mxu1 %v4004_v25 }
  0x76   :  { %3132 = vmatprep.subr.bf16.mxu1 %v4008_v31 }
  0x78   :  { %2444 = vmatmul.mubr.f32.gmra.mrb[6].mxu1 %v86_v52 }
  0x79   :  { %2446 = vmatprep.mubr.f32.mxu1 %v87_v53  ;;  %3134 = vmatpush3.bf16.msra.mxu1 %v4008_v31 }
  0x7a   :  { %3136 = vmatprep.subr.bf16.mxu1 %v4012_v37 }
  0x7c   :  { %2447 = vmatmul.mubr.f32.gmra.mrb[8].mxu1 %v88_v54 }
  0x7d   :  { %2449 = vmatprep.mubr.f32.mxu1 %v89_v55  ;;  %3138 = vmatpush3.bf16.msra.mxu1 %v4012_v37 }
  0x7e   :  { %3140 = vmatprep.subr.bf16.mxu1 %v4016_v42 }
  0x80   :  { %2450 = vmatmul.mubr.f32.gmra.mrb[10].mxu1 %v90_v56 }
  0x81   :  { %2452 = vmatprep.mubr.f32.mxu1 %v91_v57  ;;  %3142 = vmatpush3.bf16.msra.mxu1 %v4016_v42 }
  0x82   :  { %3144 = vmatprep.subr.bf16.mxu1 %v4020_v45 }
  0x84   :  { %2453 = vmatmul.mubr.f32.gmra.mrb[12].mxu1 %v92_v58 }
  0x85   :  { %2455 = vmatprep.mubr.f32.mxu1 %v93_v59  ;;  %3146 = vmatpush3.bf16.msra.mxu1 %v4020_v45 }
  0x86   :  { %3148 = vmatprep.subr.bf16.mxu1 %v4039_v15 }
  0x88   :  { %2456 = vmatmul.mubr.f32.gmra.mrb[14].mxu1 %v94_v60 }
  0x89   :  { %2458 = vmatprep.mubr.f32.mxu1 %v95_v61  ;;  %3150 = vmatpush3.bf16.msra.mxu1 %v4039_v15 }
  0x8a   :  { %3152 = vmatprep.subr.bf16.mxu1 %v3997_v14 }
  0x8c   :  { %2459 = vmatmul.mubr.f32.gmra.mrb[16].mxu1 %v96_v62 }
  0x8d   :  { %2461 = vmatprep.mubr.f32.mxu1 %v97_v63 }
  0x90   :  { %2462 = vmatmul.mubr.f32.gmra.mrb[18].mxu1 %v98_v0 }
  0x91   :  { %2464 = vmatprep.mubr.f32.mxu1 %v99_v1 }
  0x94   :  { %2465 = vmatmul.mubr.f32.gmra.mrb[20].mxu1 %v100_v2 }
  0x95   :  { %2467 = vmatprep.mubr.f32.mxu1 %v101_v3 }
  0x98   :  { %2468 = vmatmul.mubr.f32.gmra.mrb[22].mxu1 %v102_v4  ;;  %v1735_v4 = vld [vmem:[#allocation9] sm:$0xff] }
  0x99   :  { %2470 = vmatprep.mubr.f32.mxu1 %v103_v5  ;;  %v1736_v5 = vld [vmem:[#allocation9 + $0x8] sm:$0xff] }
  0x9c   :  { %2471 = vmatmul.mubr.f32.gmra.mrb[24].mxu1 %v104_v6  ;;  %v3599_v6 = vpack.c.bf16 %v1736_v5, %v1735_v4  ;;  %v1750_v4 = vld [vmem:[#allocation9 + $0x78] sm:$0xff] }
  0x9d   :  { %2473 = vmatprep.mubr.f32.mxu1 %v105_v7 }
  0xa0   :  { %2474 = vmatmul.mubr.f32.gmra.mrb[26].mxu1 %v106_v8 }
  0xa1   :  { %2476 = vmatprep.mubr.f32.mxu1 %v107_v9 }
  0xa4   :  { %2477 = vmatmul.mubr.f32.gmra.mrb[28].mxu1 %v108_v10 }
  0xa5   :  { %2479 = vmatprep.mubr.f32.mxu1 %v109_v13 }
  0xa8   :  { %2480 = vmatmul.mubr.f32.gmra.mrb[30].mxu1 %v110_v16  ;;  %v3603_v16 = vpack.c.bf16 %v1738_v12, %v1737_v11 }
 0x13f   :  { %v2436_v18 = vpop.f32.mrb[0].mxu1 }
 0x140   :  { %v206_v20 = vadd.f32 %v2436_v18, %v4050_v17  ;;  %v200_v21 = vpop.f32.mrb[1].mxu1 }
 0x141   :  { %v201_v22 = vadd.f32 %v4050_v17, %v200_v21  ;;  %v1740_v21 = vld [vmem:[#allocation9 + $0x28] sm:$0xff] }
 0x143   :  { %3698 = vtanh.f32 %v201_v22 }
 0x144   :  { %3700 = vtanh.f32 %v206_v20  ;;  %v1739_v20 = vld [vmem:[#allocation9 + $0x20] sm:$0xff] }
 0x145   :  { %v3607_v22 = vpack.c.bf16 %v1740_v21, %v1739_v20 }
 0x14d   :  { %v4054_v23 = vpop.eup %3698 }
 0x14e   :  { %v4056_v24 = vpop.eup %3700  ;;  %2514 = vmatprep.mubr.f32.mxu1 %v4054_v23 }
 0x14f   :  { %2515 = vmatmul.mubr.f32.vlgmr.msra.gmra.mrb[2].mxu1 %v4056_v24 }
 0x150   :  { %3154 = vmatpush3.bf16.msra.mxu1 %v3997_v14 }
 0x151   :  { %3156 = vmatprep.subr.bf16.mxu1 %v3999_v19 }
 0x154   :  { %3158 = vmatpush3.bf16.msra.mxu1 %v3999_v19 }
 0x155   :  { %3160 = vmatprep.subr.bf16.mxu1 %v4004_v25 }
 0x157   :  { %v4064_v26 = vpop.f32.mrb[12].mxu1 }
 0x158   :  { %v4066_v27 = vpop.f32.mrb[13].mxu1  ;;  %3162 = vmatpush3.bf16.msra.mxu1 %v4004_v25 }
 0x159   :  { %3164 = vmatprep.subr.bf16.mxu1 %v4008_v31 }
 0x15b   :  { %v4070_v28 = vpop.f32.mrb[14].mxu1 }
 0x15c   :  { %v4072_v29 = vpop.f32.mrb[15].mxu1  ;;  %3166 = vmatpush3.bf16.msra.mxu1 %v4008_v31 }
 0x15d   :  { %3168 = vmatprep.subr.bf16.mxu1 %v4012_v37 }
 0x15f   :  { %v4076_v30 = vpop.f32.mrb[16].mxu1 }
 0x160   :  { %v4078_v32 = vpop.f32.mrb[17].mxu1  ;;  %3170 = vmatpush3.bf16.msra.mxu1 %v4012_v37 }
 0x161   :  { %3172 = vmatprep.subr.bf16.mxu1 %v4016_v42 }
 0x163   :  { %v4082_v33 = vpop.f32.mrb[18].mxu1 }
 0x164   :  { %v4084_v34 = vpop.f32.mrb[19].mxu1  ;;  %3174 = vmatpush3.bf16.msra.mxu1 %v4016_v42 }
 0x165   :  { %3176 = vmatprep.subr.bf16.mxu1 %v4020_v45 }
 0x167   :  { %v4088_v35 = vpop.f32.mrb[20].mxu1 }
 0x168   :  { %v4090_v36 = vpop.f32.mrb[21].mxu1  ;;  %3178 = vmatpush3.bf16.msra.mxu1 %v4020_v45 }
 0x169   :  { %3180 = vmatprep.subr.bf16.mxu1 %v4039_v15 }
 0x16b   :  { %v4094_v38 = vpop.f32.mrb[22].mxu1 }
 0x16c   :  { %v4096_v39 = vpop.f32.mrb[23].mxu1  ;;  %3182 = vmatpush3.bf16.msra.mxu1 %v4039_v15 }
 0x16d   :  { %3184 = vmatprep.subr.bf16.mxu1 %v3997_v14 }
 0x16f   :  { %v4100_v40 = vpop.f32.mrb[24].mxu1 }
 0x170   :  { %v4102_v41 = vpop.f32.mrb[25].mxu1 }
 0x173   :  { %v4104_v43 = vpop.f32.mrb[26].mxu1 }
 0x174   :  { %v4106_v44 = vpop.f32.mrb[27].mxu1 }
 0x177   :  { %v4108_v46 = vpop.f32.mrb[28].mxu1 }
 0x178   :  { %v4110_v47 = vpop.f32.mrb[29].mxu1 }
 0x17b   :  { %v4112_v48 = vpop.f32.mrb[30].mxu1 }
 0x17c   :  { %v4114_v49 = vpop.f32.mrb[31].mxu1 }
 0x222   :  { %v2516_v50 = vpop.f32.mrb[2].mxu1 }
 0x223   :  { %v3631_v51 = vadd.f32 %v2516_v50, %v4050_v17  ;;  %v484_v52 = vpop.f32.mrb[3].mxu1  ;;  %v1741_v50 = vld [vmem:[#allocation9 + $0x30] sm:$0xff] }
 0x224   :  { %v3632_v53 = vadd.f32 %v4050_v17, %v484_v52 }
 0x226   :  { %3702 = vtanh.f32 %v3632_v53  ;;  %v1743_v53 = vld [vmem:[#allocation9 + $0x40] sm:$0xff] }
 0x227   :  { %3704 = vtanh.f32 %v3631_v51  ;;  %v1742_v51 = vld [vmem:[#allocation9 + $0x38] sm:$0xff] }
 0x228   :  { %v3611_v52 = vpack.c.bf16 %v1742_v51, %v1741_v50 }
 0x230   :  { %v4118_v54 = vpop.eup %3702 }
 0x231   :  { %v4120_v55 = vpop.eup %3704  ;;  %2549 = vmatprep.mubr.f32.mxu1 %v4118_v54 }
 0x232   :  { %2550 = vmatmul.mubr.f32.vlgmr.msra.gmra.mrb[4].mxu1 %v4120_v55 }
 0x233   :  { %3186 = vmatpush3.bf16.msra.mxu1 %v3997_v14 }
 0x234   :  { %3188 = vmatprep.subr.bf16.mxu1 %v3999_v19 }
 0x237   :  { %3190 = vmatpush3.bf16.msra.mxu1 %v3999_v19 }
 0x238   :  { %3192 = vmatprep.subr.bf16.mxu1 %v4004_v25 }
 0x23b   :  { %3194 = vmatpush3.bf16.msra.mxu1 %v4004_v25 }
 0x23c   :  { %3196 = vmatprep.subr.bf16.mxu1 %v4008_v31 }
 0x23f   :  { %3198 = vmatpush3.bf16.msra.mxu1 %v4008_v31 }
 0x240   :  { %3200 = vmatprep.subr.bf16.mxu1 %v4012_v37 }
 0x243   :  { %3202 = vmatpush3.bf16.msra.mxu1 %v4012_v37 }
 0x244   :  { %3204 = vmatprep.subr.bf16.mxu1 %v4016_v42 }
 0x247   :  { %3206 = vmatpush3.bf16.msra.mxu1 %v4016_v42 }
 0x248   :  { %3208 = vmatprep.subr.bf16.mxu1 %v4020_v45 }
 0x24b   :  { %3210 = vmatpush3.bf16.msra.mxu1 %v4020_v45 }
 0x24c   :  { %3212 = vmatprep.subr.bf16.mxu1 %v4039_v15 }
 0x24f   :  { %3214 = vmatpush3.bf16.msra.mxu1 %v4039_v15 }
 0x250   :  { %3216 = vmatprep.subr.bf16.mxu1 %v3997_v14 }
 0x305   :  { %v2551_v56 = vpop.f32.mrb[4].mxu1 }
 0x306   :  { %v3633_v57 = vadd.f32 %v2551_v56, %v4050_v17  ;;  %v570_v58 = vpop.f32.mrb[5].mxu1  ;;  %v1744_v56 = vld [vmem:[#allocation9 + $0x48] sm:$0xff] }
 0x307   :  { %v3634_v59 = vadd.f32 %v4050_v17, %v570_v58  ;;  %v1745_v58 = vld [vmem:[#allocation9 + $0x50] sm:$0xff] }
 0x309   :  { %3706 = vtanh.f32 %v3634_v59  ;;  %v1746_v59 = vld [vmem:[#allocation9 + $0x58] sm:$0xff] }
 0x30a   :  { %3708 = vtanh.f32 %v3633_v57  ;;  %v3615_v57 = vpack.c.bf16 %v1744_v56, %v1743_v53 }
 0x313   :  { %v4142_v60 = vpop.eup %3706 }
 0x314   :  { %v4144_v61 = vpop.eup %3708  ;;  %2584 = vmatprep.mubr.f32.mxu1 %v4142_v60 }
 0x315   :  { %2585 = vmatmul.mubr.f32.vlgmr.msra.gmra.mrb[6].mxu1 %v4144_v61 }
 0x316   :  { %3218 = vmatpush3.bf16.msra.mxu1 %v3997_v14 }
 0x317   :  { %3220 = vmatprep.subr.bf16.mxu1 %v3999_v19 }
 0x31a   :  { %3222 = vmatpush3.bf16.msra.mxu1 %v3999_v19 }
 0x31b   :  { %3224 = vmatprep.subr.bf16.mxu1 %v4004_v25 }
 0x31e   :  { %3226 = vmatpush3.bf16.msra.mxu1 %v4004_v25 }
 0x31f   :  { %3228 = vmatprep.subr.bf16.mxu1 %v4008_v31 }
 0x322   :  { %3230 = vmatpush3.bf16.msra.mxu1 %v4008_v31 }
 0x323   :  { %3232 = vmatprep.subr.bf16.mxu1 %v4012_v37 }
 0x326   :  { %3234 = vmatpush3.bf16.msra.mxu1 %v4012_v37 }
 0x327   :  { %3236 = vmatprep.subr.bf16.mxu1 %v4016_v42 }
 0x32a   :  { %3238 = vmatpush3.bf16.msra.mxu1 %v4016_v42 }
 0x32b   :  { %3240 = vmatprep.subr.bf16.mxu1 %v4020_v45 }
 0x32e   :  { %3242 = vmatpush3.bf16.msra.mxu1 %v4020_v45 }
 0x32f   :  { %3244 = vmatprep.subr.bf16.mxu1 %v4039_v15 }
 0x332   :  { %3246 = vmatpush3.bf16.msra.mxu1 %v4039_v15 }
 0x333   :  { %3248 = vmatprep.subr.bf16.mxu1 %v3997_v14 }
 0x3e8   :  { %v2586_v62 = vpop.f32.mrb[6].mxu1 }
 0x3e9   :  { %v3635_v63 = vadd.f32 %v2586_v62, %v4050_v17  ;;  %v656_v0 = vpop.f32.mrb[7].mxu1  ;;  %v3619_v62 = vpack.c.bf16 %v1746_v59, %v1745_v58  ;;  %v266_v59 = vadd.f32 %v4064_v26, %v4050_v17  ;;  %v276_v26 = vadd.f32 %v4070_v28, %v4050_v17 }
 0x3ea   :  { %v3636_v1 = vadd.f32 %v4050_v17, %v656_v0  ;;  %v1748_v0 = vld [vmem:[#allocation9 + $0x68] sm:$0xff]  ;;  %v286_v28 = vadd.f32 %v4076_v30, %v4050_v17  ;;  %v296_v30 = vadd.f32 %v4082_v33, %v4050_v17  ;;  %v306_v33 = vadd.f32 %v4088_v35, %v4050_v17 }
 0x3eb   :  { %v316_v35 = vadd.f32 %v4094_v38, %v4050_v17  ;;  %v326_v38 = vadd.f32 %v4100_v40, %v4050_v17  ;;  %v336_v40 = vadd.f32 %v4104_v43, %v4050_v17 }
 0x3ec   :  { %3710 = vtanh.f32 %v3636_v1  ;;  %v1749_v1 = vld [vmem:[#allocation9 + $0x70] sm:$0xff] }
 0x3ed   :  { %3712 = vtanh.f32 %v3635_v63  ;;  %v1747_v63 = vld [vmem:[#allocation9 + $0x60] sm:$0xff]  ;;  %v3627_v5 = vpack.c.bf16 %v1750_v4, %v1749_v1 }
 0x3f6   :  { %v4166_v2 = vpop.eup %3710 }
 0x3f7   :  { %v4168_v3 = vpop.eup %3712  ;;  %2619 = vmatprep.mubr.f32.mxu1 %v4166_v2 }
 0x3f8   :  { %2620 = vmatmul.mubr.f32.vlgmr.msra.gmra.mrb[8].mxu1 %v4168_v3 }
 0x3f9   :  { %3250 = vmatpush3.bf16.msra.mxu1 %v3997_v14 }
 0x3fa   :  { %3252 = vmatprep.subr.bf16.mxu1 %v3999_v19 }
 0x3fd   :  { %3254 = vmatpush3.bf16.msra.mxu1 %v3999_v19 }
 0x3fe   :  { %3256 = vmatprep.subr.bf16.mxu1 %v4004_v25 }
 0x401   :  { %3258 = vmatpush3.bf16.msra.mxu1 %v4004_v25 }
 0x402   :  { %3260 = vmatprep.subr.bf16.mxu1 %v4008_v31 }
 0x405   :  { %3262 = vmatpush3.bf16.msra.mxu1 %v4008_v31 }
 0x406   :  { %3264 = vmatprep.subr.bf16.mxu1 %v4012_v37 }
 0x409   :  { %3266 = vmatpush3.bf16.msra.mxu1 %v4012_v37 }
 0x40a   :  { %3268 = vmatprep.subr.bf16.mxu1 %v4016_v42 }
 0x40d   :  { %3270 = vmatpush3.bf16.msra.mxu1 %v4016_v42 }
 0x40e   :  { %3272 = vmatprep.subr.bf16.mxu1 %v4020_v45 }
 0x411   :  { %3274 = vmatpush3.bf16.msra.mxu1 %v4020_v45 }
 0x412   :  { %3276 = vmatprep.subr.bf16.mxu1 %v4039_v15 }
 0x415   :  { %3278 = vmatpush3.bf16.msra.mxu1 %v4039_v15 }
 0x416   :  { %3600 = vmatprep.subr.bf16.mxu1 %v3599_v6 }
 0x4cb   :  { %v2621_v7 = vpop.f32.mrb[8].mxu1 }
 0x4cc   :  { %v3637_v8 = vadd.f32 %v2621_v7, %v4050_v17  ;;  %v742_v9 = vpop.f32.mrb[9].mxu1 }
 0x4cd   :  { %v3638_v10 = vadd.f32 %v4050_v17, %v742_v9 }
 0x4cf   :  { %3714 = vtanh.f32 %v3638_v10 }
 0x4d0   :  { %3716 = vtanh.f32 %v3637_v8 }
 0x4d9   :  { %v3715_v13 = vpop.eup %3714 }
 0x4da   :  { %v3717_v18 = vpop.eup %3716  ;;  %2654 = vmatprep.mubr.f32.mxu1 %v3715_v13 }
 0x4db   :  { %2655 = vmatmul.mubr.f32.vlgmr.msra.gmra.mrb[10].mxu1 %v3717_v18 }
 0x4dc   :  { %3602 = vmatpush3.bf16.msra.mxu1 %v3599_v6  ;;  %3039 = vmatprep.mubr.f32.mxu1 %v4054_v23  ;;  %v3623_v23 = vpack.c.bf16 %v1748_v0, %v1747_v63 }
 0x4dd   :  { %3604 = vmatprep.subr.bf16.mxu1 %v3603_v16 }
 0x4e0   :  { %3606 = vmatpush3.bf16.msra.mxu1 %v3603_v16 }
 0x4e1   :  { %3608 = vmatprep.subr.bf16.mxu1 %v3607_v22 }
 0x4e4   :  { %3610 = vmatpush3.bf16.msra.mxu1 %v3607_v22 }
 0x4e5   :  { %3612 = vmatprep.subr.bf16.mxu1 %v3611_v52 }
 0x4e8   :  { %3614 = vmatpush3.bf16.msra.mxu1 %v3611_v52 }
 0x4e9   :  { %3616 = vmatprep.subr.bf16.mxu1 %v3615_v57 }
 0x4ec   :  { %3618 = vmatpush3.bf16.msra.mxu1 %v3615_v57 }
 0x4ed   :  { %3620 = vmatprep.subr.bf16.mxu1 %v3619_v62 }
 0x4f0   :  { %3622 = vmatpush3.bf16.msra.mxu1 %v3619_v62  ;;  %v261_v62 = vadd.f32 %v4050_v17, %v4066_v27  ;;  %v271_v27 = vadd.f32 %v4050_v17, %v4072_v29  ;;  %v281_v29 = vadd.f32 %v4050_v17, %v4078_v32  ;;  %v291_v32 = vadd.f32 %v4050_v17, %v4084_v34 }
 0x4f1   :  { %3624 = vmatprep.subr.bf16.mxu1 %v3623_v23  ;;  %v301_v34 = vadd.f32 %v4050_v17, %v4090_v36  ;;  %v311_v36 = vadd.f32 %v4050_v17, %v4096_v39  ;;  %v321_v39 = vadd.f32 %v4050_v17, %v4102_v41  ;;  %v331_v41 = vadd.f32 %v4050_v17, %v4106_v44 }
 0x4f4   :  { %3626 = vmatpush3.bf16.msra.mxu1 %v3623_v23 }
 0x4f5   :  { %3628 = vmatprep.subr.bf16.mxu1 %v3627_v5 }
 0x4f8   :  { %3630 = vmatpush3.bf16.msra.mxu1 %v3627_v5 }
 0x4fb   :  { %3040 = vmatmul.mubr.f32.vlgmr.msra.gmra.mrb[32].mxu1 %v4056_v24 }
 0x4fc   :  { %3042 = vmatprep.mubr.f32.mxu1 %v4118_v54 }
 0x4ff   :  { %3043 = vmatmul.mubr.f32.gmra.mrb[34].mxu1 %v4120_v55 }
 0x500   :  { %3045 = vmatprep.mubr.f32.mxu1 %v4142_v60  ;;  %v4209_v60 = vld [vmem:[%s4438_s5] ss:$0 sm:$0xff] }
 0x503   :  { %3046 = vmatmul.mubr.f32.gmra.mrb[36].mxu1 %v4144_v61 }
 0x504   :  { %3048 = vmatprep.mubr.f32.mxu1 %v4166_v2 }
 0x507   :  { %3049 = vmatmul.mubr.f32.gmra.mrb[38].mxu1 %v4168_v3 }
 0x508   :  { %3051 = vmatprep.mubr.f32.mxu1 %v3715_v13 }
 0x50b   :  { %3052 = vmatmul.mubr.f32.gmra.mrb[40].mxu1 %v3717_v18 }
 0x5ae   :  { %v2656_v6 = vpop.f32.mrb[10].mxu1 }
 0x5af   :  { %v3639_v7 = vadd.f32 %v2656_v6, %v4050_v17  ;;  %v828_v8 = vpop.f32.mrb[11].mxu1 }
 0x5b0   :  { %v3640_v24 = vadd.f32 %v4050_v17, %v828_v8 }
 0x5b2   :  { %3718 = vtanh.f32 %v3640_v24 }
 0x5b3   :  { %3720 = vtanh.f32 %v3639_v7 }
 0x5bc   :  { %v3719_v54 = vpop.eup %3718 }
 0x5bd   :  { %v3721_v55 = vpop.eup %3720  ;;  %2689 = vmatprep.mubr.f32.mxu0 %v3719_v54  ;;  %3054 = vmatprep.mubr.f32.mxu1 %v3719_v54 }
 0x5be   :  { %2690 = vmatmul.mubr.f32.vlgmr.msra.gmra.mrb[0].mxu0 %v3721_v55  ;;  %3055 = vmatmul.mubr.f32.gmra.mrb[42].mxu1 %v3721_v55 }
 0x5bf   :  { %3314 = vmatpush3.bf16.msra.mxu0 %v3997_v14 }
 0x5c0   :  { %3316 = vmatprep.subr.bf16.mxu0 %v3999_v19 }
 0x5c3   :  { %3318 = vmatpush3.bf16.msra.mxu0 %v3999_v19 }
 0x5c4   :  { %3320 = vmatprep.subr.bf16.mxu0 %v4004_v25 }
 0x5c7   :  { %3322 = vmatpush3.bf16.msra.mxu0 %v4004_v25 }
 0x5c8   :  { %3324 = vmatprep.subr.bf16.mxu0 %v4008_v31 }
 0x5cb   :  { %3326 = vmatpush3.bf16.msra.mxu0 %v4008_v31 }
 0x5cc   :  { %3328 = vmatprep.subr.bf16.mxu0 %v4012_v37 }
 0x5ce   :  { %v3041_v61 = vpop.f32.mrb[32].mxu1 }
 0x5cf   :  { %v1830_v2 = vadd.f32 %v3041_v61, %v4209_v60  ;;  %v1824_v3 = vpop.f32.mrb[33].mxu1  ;;  %3330 = vmatpush3.bf16.msra.mxu0 %v4012_v37 }
 0x5d0   :  { %v1825_v9 = vadd.f32 %v4209_v60, %v1824_v3  ;;  %3332 = vmatprep.subr.bf16.mxu0 %v4016_v42 }
 0x5d1   :  { %1984 = vst [vmem:[#allocation11 + $0x8] sm:$0xff] %v1830_v2 }
 0x5d2   :  { %1983 = vst [vmem:[#allocation11] sm:$0xff] %v1825_v9  ;;  %v3044_v10 = vpop.f32.mrb[34].mxu1 }
 0x5d3   :  { %v1840_v11 = vadd.f32 %v3044_v10, %v4209_v60  ;;  %v1834_v12 = vpop.f32.mrb[35].mxu1  ;;  %3334 = vmatpush3.bf16.msra.mxu0 %v4016_v42 }
 0x5d4   :  { %v1835_v13 = vadd.f32 %v4209_v60, %v1834_v12  ;;  %3336 = vmatprep.subr.bf16.mxu0 %v4020_v45 }
 0x5d5   :  { %1986 = vst [vmem:[#allocation11 + $0x18] sm:$0xff] %v1840_v11 }
 0x5d6   :  { %1985 = vst [vmem:[#allocation11 + $0x10] sm:$0xff] %v1835_v13  ;;  %v3047_v16 = vpop.f32.mrb[36].mxu1 }
 0x5d7   :  { %v1850_v18 = vadd.f32 %v3047_v16, %v4209_v60  ;;  %v1844_v20 = vpop.f32.mrb[37].mxu1  ;;  %3338 = vmatpush3.bf16.msra.mxu0 %v4020_v45 }
 0x5d8   :  { %v1845_v21 = vadd.f32 %v4209_v60, %v1844_v20  ;;  %3340 = vmatprep.subr.bf16.mxu0 %v4039_v15 }
 0x5d9   :  { %1988 = vst [vmem:[#allocation11 + $0x28] sm:$0xff] %v1850_v18 }
 0x5da   :  { %1987 = vst [vmem:[#allocation11 + $0x20] sm:$0xff] %v1845_v21  ;;  %v3050_v22 = vpop.f32.mrb[38].mxu1 }
 0x5db   :  { %v1860_v50 = vadd.f32 %v3050_v22, %v4209_v60  ;;  %v1854_v51 = vpop.f32.mrb[39].mxu1  ;;  %3342 = vmatpush3.bf16.msra.mxu0 %v4039_v15 }
 0x5dc   :  { %v1855_v52 = vadd.f32 %v4209_v60, %v1854_v51  ;;  %3344 = vmatprep.subr.bf16.mxu0 %v3997_v14 }
 0x5dd   :  { %1990 = vst [vmem:[#allocation11 + $0x38] sm:$0xff] %v1860_v50 }
 0x5de   :  { %1989 = vst [vmem:[#allocation11 + $0x30] sm:$0xff] %v1855_v52  ;;  %v3053_v53 = vpop.f32.mrb[40].mxu1 }
 0x5df   :  { %v1870_v56 = vadd.f32 %v3053_v53, %v4209_v60  ;;  %v1864_v57 = vpop.f32.mrb[41].mxu1 }
 0x5e0   :  { %v1865_v58 = vadd.f32 %v4209_v60, %v1864_v57 }
 0x5e1   :  { %1992 = vst [vmem:[#allocation11 + $0x48] sm:$0xff] %v1870_v56 }
 0x5e2   :  { %1991 = vst [vmem:[#allocation11 + $0x40] sm:$0xff] %v1865_v58 }
 0x691   :  { %v2691_v63 = vpop.f32.mrb[0].mxu0  ;;  %v3056_v0 = vpop.f32.mrb[42].mxu1 }
 0x692   :  { %v924_v23 = vadd.f32 %v2691_v63, %v266_v59  ;;  %v1880_v1 = vadd.f32 %v3056_v0, %v4209_v60  ;;  %v914_v4 = vpop.f32.mrb[1].mxu0  ;;  %v1874_v5 = vpop.f32.mrb[43].mxu1 }
 0x693   :  { %v923_v6 = vadd.f32 %v914_v4, %v261_v62  ;;  %v1875_v7 = vadd.f32 %v4209_v60, %v1874_v5 }
 0x694   :  { %1994 = vst [vmem:[#allocation11 + $0x58] sm:$0xff] %v1880_v1 }
 0x695   :  { %3722 = vtanh.f32 %v923_v6  ;;  %1993 = vst [vmem:[#allocation11 + $0x50] sm:$0xff] %v1875_v7 }
 0x696   :  { %3724 = vtanh.f32 %v924_v23 }
 0x69f   :  { %v3723_v8 = vpop.eup %3722 }
 0x6a0   :  { %v3725_v24 = vpop.eup %3724  ;;  %2724 = vmatprep.mubr.f32.mxu0 %v3723_v8  ;;  %3057 = vmatprep.mubr.f32.mxu1 %v3723_v8 }
 0x6a1   :  { %2725 = vmatmul.mubr.f32.vlgmr.msra.gmra.mrb[2].mxu0 %v3725_v24  ;;  %3058 = vmatmul.mubr.f32.gmra.mrb[44].mxu1 %v3725_v24 }
 0x6a2   :  { %3346 = vmatpush3.bf16.msra.mxu0 %v3997_v14 }
 0x6a3   :  { %3348 = vmatprep.subr.bf16.mxu0 %v3999_v19 }
 0x6a6   :  { %3350 = vmatpush3.bf16.msra.mxu0 %v3999_v19 }
 0x6a7   :  { %3352 = vmatprep.subr.bf16.mxu0 %v4004_v25 }
 0x6aa   :  { %3354 = vmatpush3.bf16.msra.mxu0 %v4004_v25 }
 0x6ab   :  { %3356 = vmatprep.subr.bf16.mxu0 %v4008_v31 }
 0x6ae   :  { %3358 = vmatpush3.bf16.msra.mxu0 %v4008_v31 }
 0x6af   :  { %3360 = vmatprep.subr.bf16.mxu0 %v4012_v37 }
 0x6b2   :  { %3362 = vmatpush3.bf16.msra.mxu0 %v4012_v37 }
 0x6b3   :  { %3364 = vmatprep.subr.bf16.mxu0 %v4016_v42 }
 0x6b6   :  { %3366 = vmatpush3.bf16.msra.mxu0 %v4016_v42 }
 0x6b7   :  { %3368 = vmatprep.subr.bf16.mxu0 %v4020_v45 }
 0x6ba   :  { %3370 = vmatpush3.bf16.msra.mxu0 %v4020_v45 }
 0x6bb   :  { %3372 = vmatprep.subr.bf16.mxu0 %v4039_v15 }
 0x6be   :  { %3374 = vmatpush3.bf16.msra.mxu0 %v4039_v15 }
 0x6bf   :  { %3376 = vmatprep.subr.bf16.mxu0 %v3997_v14 }
 0x774   :  { %v2726_v54 = vpop.f32.mrb[2].mxu0  ;;  %v3059_v55 = vpop.f32.mrb[44].mxu1 }
 0x775   :  { %v1010_v61 = vadd.f32 %v2726_v54, %v276_v26  ;;  %v1890_v2 = vadd.f32 %v3059_v55, %v4209_v60  ;;  %v1000_v3 = vpop.f32.mrb[3].mxu0  ;;  %v1884_v9 = vpop.f32.mrb[45].mxu1 }
 0x776   :  { %v1009_v10 = vadd.f32 %v1000_v3, %v271_v27  ;;  %v1885_v11 = vadd.f32 %v4209_v60, %v1884_v9 }
 0x777   :  { %1996 = vst [vmem:[#allocation11 + $0x68] sm:$0xff] %v1890_v2 }
 0x778   :  { %3726 = vtanh.f32 %v1009_v10  ;;  %1995 = vst [vmem:[#allocation11 + $0x60] sm:$0xff] %v1885_v11 }
 0x779   :  { %3728 = vtanh.f32 %v1010_v61 }
 0x782   :  { %v3727_v12 = vpop.eup %3726 }
 0x783   :  { %v3729_v13 = vpop.eup %3728  ;;  %2759 = vmatprep.mubr.f32.mxu0 %v3727_v12  ;;  %3060 = vmatprep.mubr.f32.mxu1 %v3727_v12 }
 0x784   :  { %2760 = vmatmul.mubr.f32.vlgmr.msra.gmra.mrb[4].mxu0 %v3729_v13  ;;  %3061 = vmatmul.mubr.f32.gmra.mrb[46].mxu1 %v3729_v13 }
 0x785   :  { %3378 = vmatpush3.bf16.msra.mxu0 %v3997_v14 }
 0x786   :  { %3380 = vmatprep.subr.bf16.mxu0 %v3999_v19 }
 0x789   :  { %3382 = vmatpush3.bf16.msra.mxu0 %v3999_v19 }
 0x78a   :  { %3384 = vmatprep.subr.bf16.mxu0 %v4004_v25 }
 0x78d   :  { %3386 = vmatpush3.bf16.msra.mxu0 %v4004_v25 }
 0x78e   :  { %3388 = vmatprep.subr.bf16.mxu0 %v4008_v31 }
 0x791   :  { %3390 = vmatpush3.bf16.msra.mxu0 %v4008_v31 }
 0x792   :  { %3392 = vmatprep.subr.bf16.mxu0 %v4012_v37 }
 0x795   :  { %3394 = vmatpush3.bf16.msra.mxu0 %v4012_v37 }
 0x796   :  { %3396 = vmatprep.subr.bf16.mxu0 %v4016_v42 }
 0x799   :  { %3398 = vmatpush3.bf16.msra.mxu0 %v4016_v42 }
 0x79a   :  { %3400 = vmatprep.subr.bf16.mxu0 %v4020_v45 }
 0x79d   :  { %3402 = vmatpush3.bf16.msra.mxu0 %v4020_v45 }
 0x79e   :  { %3404 = vmatprep.subr.bf16.mxu0 %v4039_v15 }
 0x7a1   :  { %3406 = vmatpush3.bf16.msra.mxu0 %v4039_v15 }
 0x7a2   :  { %3408 = vmatprep.subr.bf16.mxu0 %v3997_v14 }
 0x857   :  { %v2761_v16 = vpop.f32.mrb[4].mxu0  ;;  %v3062_v18 = vpop.f32.mrb[46].mxu1 }
 0x858   :  { %v1096_v20 = vadd.f32 %v2761_v16, %v286_v28  ;;  %v1900_v21 = vadd.f32 %v3062_v18, %v4209_v60  ;;  %v1086_v22 = vpop.f32.mrb[5].mxu0  ;;  %v1894_v50 = vpop.f32.mrb[47].mxu1 }
 0x859   :  { %v1095_v51 = vadd.f32 %v1086_v22, %v281_v29  ;;  %v1895_v52 = vadd.f32 %v4209_v60, %v1894_v50 }
 0x85a   :  { %1998 = vst [vmem:[#allocation11 + $0x78] sm:$0xff] %v1900_v21 }
 0x85b   :  { %3730 = vtanh.f32 %v1095_v51  ;;  %1997 = vst [vmem:[#allocation11 + $0x70] sm:$0xff] %v1895_v52 }
 0x85c   :  { %3732 = vtanh.f32 %v1096_v20 }
 0x865   :  { %v3731_v53 = vpop.eup %3730 }
 0x866   :  { %v3733_v56 = vpop.eup %3732  ;;  %2794 = vmatprep.mubr.f32.mxu0 %v3731_v53  ;;  %3063 = vmatprep.mubr.f32.mxu1 %v3731_v53 }
 0x867   :  { %2795 = vmatmul.mubr.f32.vlgmr.msra.gmra.mrb[6].mxu0 %v3733_v56  ;;  %3064 = vmatmul.mubr.f32.gmra.mrb[48].mxu1 %v3733_v56 }
 0x868   :  { %3410 = vmatpush3.bf16.msra.mxu0 %v3997_v14 }
 0x869   :  { %3412 = vmatprep.subr.bf16.mxu0 %v3999_v19 }
 0x86c   :  { %3414 = vmatpush3.bf16.msra.mxu0 %v3999_v19 }
 0x86d   :  { %3416 = vmatprep.subr.bf16.mxu0 %v4004_v25 }
 0x870   :  { %3418 = vmatpush3.bf16.msra.mxu0 %v4004_v25 }
 0x871   :  { %3420 = vmatprep.subr.bf16.mxu0 %v4008_v31 }
 0x874   :  { %3422 = vmatpush3.bf16.msra.mxu0 %v4008_v31 }
 0x875   :  { %3424 = vmatprep.subr.bf16.mxu0 %v4012_v37 }
 0x878   :  { %3426 = vmatpush3.bf16.msra.mxu0 %v4012_v37 }
 0x879   :  { %3428 = vmatprep.subr.bf16.mxu0 %v4016_v42 }
 0x87c   :  { %3430 = vmatpush3.bf16.msra.mxu0 %v4016_v42 }
 0x87d   :  { %3432 = vmatprep.subr.bf16.mxu0 %v4020_v45 }
 0x880   :  { %3434 = vmatpush3.bf16.msra.mxu0 %v4020_v45 }
 0x881   :  { %3436 = vmatprep.subr.bf16.mxu0 %v4039_v15 }
 0x884   :  { %3438 = vmatpush3.bf16.msra.mxu0 %v4039_v15 }
 0x885   :  { %3440 = vmatprep.subr.bf16.mxu0 %v3997_v14 }
 0x93a   :  { %v2796_v57 = vpop.f32.mrb[6].mxu0  ;;  %v3065_v58 = vpop.f32.mrb[48].mxu1 }
 0x93b   :  { %v1182_v59 = vadd.f32 %v2796_v57, %v296_v30  ;;  %v1910_v62 = vadd.f32 %v3065_v58, %v4209_v60  ;;  %v1172_v63 = vpop.f32.mrb[7].mxu0  ;;  %v1904_v0 = vpop.f32.mrb[49].mxu1 }
 0x93c   :  { %v1181_v23 = vadd.f32 %v1172_v63, %v291_v32  ;;  %v1905_v1 = vadd.f32 %v4209_v60, %v1904_v0 }
 0x93d   :  { %2000 = vst [vmem:[#allocation11 + $0x88] sm:$0xff] %v1910_v62 }
 0x93e   :  { %3734 = vtanh.f32 %v1181_v23  ;;  %1999 = vst [vmem:[#allocation11 + $0x80] sm:$0xff] %v1905_v1 }
 0x93f   :  { %3736 = vtanh.f32 %v1182_v59 }
 0x948   :  { %v3735_v4 = vpop.eup %3734 }
 0x949   :  { %v3737_v5 = vpop.eup %3736  ;;  %2829 = vmatprep.mubr.f32.mxu0 %v3735_v4  ;;  %3066 = vmatprep.mubr.f32.mxu1 %v3735_v4 }
 0x94a   :  { %2830 = vmatmul.mubr.f32.vlgmr.msra.gmra.mrb[8].mxu0 %v3737_v5  ;;  %3067 = vmatmul.mubr.f32.gmra.mrb[50].mxu1 %v3737_v5 }
 0x94b   :  { %3442 = vmatpush3.bf16.msra.mxu0 %v3997_v14 }
 0x94c   :  { %3444 = vmatprep.subr.bf16.mxu0 %v3999_v19 }
 0x94f   :  { %3446 = vmatpush3.bf16.msra.mxu0 %v3999_v19 }
 0x950   :  { %3448 = vmatprep.subr.bf16.mxu0 %v4004_v25 }
 0x953   :  { %3450 = vmatpush3.bf16.msra.mxu0 %v4004_v25 }
 0x954   :  { %3452 = vmatprep.subr.bf16.mxu0 %v4008_v31 }
 0x957   :  { %3454 = vmatpush3.bf16.msra.mxu0 %v4008_v31 }
 0x958   :  { %3456 = vmatprep.subr.bf16.mxu0 %v4012_v37 }
 0x95b   :  { %3458 = vmatpush3.bf16.msra.mxu0 %v4012_v37 }
 0x95c   :  { %3460 = vmatprep.subr.bf16.mxu0 %v4016_v42 }
 0x95f   :  { %3462 = vmatpush3.bf16.msra.mxu0 %v4016_v42 }
 0x960   :  { %3464 = vmatprep.subr.bf16.mxu0 %v4020_v45 }
 0x963   :  { %3466 = vmatpush3.bf16.msra.mxu0 %v4020_v45 }
 0x964   :  { %3468 = vmatprep.subr.bf16.mxu0 %v4039_v15 }
 0x967   :  { %3470 = vmatpush3.bf16.msra.mxu0 %v4039_v15 }
 0x968   :  { %3472 = vmatprep.subr.bf16.mxu0 %v3997_v14 }
 0xa1d   :  { %v2831_v6 = vpop.f32.mrb[8].mxu0  ;;  %v3068_v7 = vpop.f32.mrb[50].mxu1 }
 0xa1e   :  { %v1268_v8 = vadd.f32 %v2831_v6, %v306_v33  ;;  %v1920_v24 = vadd.f32 %v3068_v7, %v4209_v60  ;;  %v1258_v26 = vpop.f32.mrb[9].mxu0  ;;  %v1914_v27 = vpop.f32.mrb[51].mxu1 }
 0xa1f   :  { %v1267_v54 = vadd.f32 %v1258_v26, %v301_v34  ;;  %v1915_v55 = vadd.f32 %v4209_v60, %v1914_v27 }
 0xa20   :  { %2002 = vst [vmem:[#allocation11 + $0x98] sm:$0xff] %v1920_v24 }
 0xa21   :  { %3738 = vtanh.f32 %v1267_v54  ;;  %2001 = vst [vmem:[#allocation11 + $0x90] sm:$0xff] %v1915_v55 }
 0xa22   :  { %3740 = vtanh.f32 %v1268_v8 }
 0xa2b   :  { %v3739_v61 = vpop.eup %3738 }
 0xa2c   :  { %v3741_v2 = vpop.eup %3740  ;;  %2864 = vmatprep.mubr.f32.mxu0 %v3739_v61  ;;  %3069 = vmatprep.mubr.f32.mxu1 %v3739_v61 }
 0xa2d   :  { %2865 = vmatmul.mubr.f32.vlgmr.msra.gmra.mrb[10].mxu0 %v3741_v2  ;;  %3070 = vmatmul.mubr.f32.gmra.mrb[52].mxu1 %v3741_v2 }
 0xa2e   :  { %3474 = vmatpush3.bf16.msra.mxu0 %v3997_v14 }
 0xa2f   :  { %3476 = vmatprep.subr.bf16.mxu0 %v3999_v19 }
 0xa32   :  { %3478 = vmatpush3.bf16.msra.mxu0 %v3999_v19 }
 0xa33   :  { %3480 = vmatprep.subr.bf16.mxu0 %v4004_v25 }
 0xa36   :  { %3482 = vmatpush3.bf16.msra.mxu0 %v4004_v25 }
 0xa37   :  { %3484 = vmatprep.subr.bf16.mxu0 %v4008_v31 }
 0xa3a   :  { %3486 = vmatpush3.bf16.msra.mxu0 %v4008_v31 }
 0xa3b   :  { %3488 = vmatprep.subr.bf16.mxu0 %v4012_v37 }
 0xa3e   :  { %3490 = vmatpush3.bf16.msra.mxu0 %v4012_v37 }
 0xa3f   :  { %3492 = vmatprep.subr.bf16.mxu0 %v4016_v42 }
 0xa42   :  { %3494 = vmatpush3.bf16.msra.mxu0 %v4016_v42 }
 0xa43   :  { %3496 = vmatprep.subr.bf16.mxu0 %v4020_v45 }
 0xa46   :  { %3498 = vmatpush3.bf16.msra.mxu0 %v4020_v45 }
 0xa47   :  { %3500 = vmatprep.subr.bf16.mxu0 %v4039_v15 }
 0xa4a   :  { %3502 = vmatpush3.bf16.msra.mxu0 %v4039_v15 }
 0xa4b   :  { %3504 = vmatprep.subr.bf16.mxu0 %v3997_v14 }
 0xb00   :  { %v2866_v3 = vpop.f32.mrb[10].mxu0  ;;  %v3071_v9 = vpop.f32.mrb[52].mxu1 }
 0xb01   :  { %v1354_v10 = vadd.f32 %v2866_v3, %v316_v35  ;;  %v1930_v11 = vadd.f32 %v3071_v9, %v4209_v60  ;;  %v1344_v12 = vpop.f32.mrb[11].mxu0  ;;  %v1924_v13 = vpop.f32.mrb[53].mxu1 }
 0xb02   :  { %v1353_v28 = vadd.f32 %v1344_v12, %v311_v36  ;;  %v1925_v29 = vadd.f32 %v4209_v60, %v1924_v13 }
 0xb03   :  { %2004 = vst [vmem:[#allocation11 + $0xa8] sm:$0xff] %v1930_v11 }
 0xb04   :  { %3742 = vtanh.f32 %v1353_v28  ;;  %2003 = vst [vmem:[#allocation11 + $0xa0] sm:$0xff] %v1925_v29 }
 0xb05   :  { %3744 = vtanh.f32 %v1354_v10 }
 0xb0e   :  { %v3743_v16 = vpop.eup %3742 }
 0xb0f   :  { %v3745_v18 = vpop.eup %3744  ;;  %2899 = vmatprep.mubr.f32.mxu0 %v3743_v16  ;;  %3072 = vmatprep.mubr.f32.mxu1 %v3743_v16 }
 0xb10   :  { %2900 = vmatmul.mubr.f32.vlgmr.msra.gmra.mrb[12].mxu0 %v3745_v18  ;;  %3073 = vmatmul.mubr.f32.gmra.mrb[54].mxu1 %v3745_v18 }
 0xb11   :  { %3506 = vmatpush3.bf16.msra.mxu0 %v3997_v14 }
 0xb12   :  { %3508 = vmatprep.subr.bf16.mxu0 %v3999_v19 }
 0xb15   :  { %3510 = vmatpush3.bf16.msra.mxu0 %v3999_v19 }
 0xb16   :  { %3512 = vmatprep.subr.bf16.mxu0 %v4004_v25 }
 0xb19   :  { %3514 = vmatpush3.bf16.msra.mxu0 %v4004_v25 }
 0xb1a   :  { %3516 = vmatprep.subr.bf16.mxu0 %v4008_v31 }
 0xb1d   :  { %3518 = vmatpush3.bf16.msra.mxu0 %v4008_v31 }
 0xb1e   :  { %3520 = vmatprep.subr.bf16.mxu0 %v4012_v37 }
 0xb21   :  { %3522 = vmatpush3.bf16.msra.mxu0 %v4012_v37 }
 0xb22   :  { %3524 = vmatprep.subr.bf16.mxu0 %v4016_v42 }
 0xb25   :  { %3526 = vmatpush3.bf16.msra.mxu0 %v4016_v42 }
 0xb26   :  { %3528 = vmatprep.subr.bf16.mxu0 %v4020_v45 }
 0xb29   :  { %3530 = vmatpush3.bf16.msra.mxu0 %v4020_v45 }
 0xb2a   :  { %3532 = vmatprep.subr.bf16.mxu0 %v4039_v15 }
 0xb2d   :  { %3534 = vmatpush3.bf16.msra.mxu0 %v4039_v15 }
 0xb2e   :  { %3536 = vmatprep.subr.bf16.mxu0 %v3997_v14 }
 0xbe3   :  { %v2901_v20 = vpop.f32.mrb[12].mxu0  ;;  %v3074_v21 = vpop.f32.mrb[54].mxu1 }
 0xbe4   :  { %v1440_v22 = vadd.f32 %v2901_v20, %v326_v38  ;;  %v1940_v50 = vadd.f32 %v3074_v21, %v4209_v60  ;;  %v1430_v51 = vpop.f32.mrb[13].mxu0  ;;  %v1934_v52 = vpop.f32.mrb[55].mxu1 }
 0xbe5   :  { %v1439_v53 = vadd.f32 %v1430_v51, %v321_v39  ;;  %v1935_v56 = vadd.f32 %v4209_v60, %v1934_v52 }
 0xbe6   :  { %2006 = vst [vmem:[#allocation11 + $0xb8] sm:$0xff] %v1940_v50 }
 0xbe7   :  { %3746 = vtanh.f32 %v1439_v53  ;;  %2005 = vst [vmem:[#allocation11 + $0xb0] sm:$0xff] %v1935_v56 }
 0xbe8   :  { %3748 = vtanh.f32 %v1440_v22 }
 0xbf1   :  { %v3747_v30 = vpop.eup %3746 }
 0xbf2   :  { %v3749_v32 = vpop.eup %3748  ;;  %2934 = vmatprep.mubr.f32.mxu0 %v3747_v30  ;;  %3075 = vmatprep.mubr.f32.mxu1 %v3747_v30 }
 0xbf3   :  { %2935 = vmatmul.mubr.f32.vlgmr.msra.gmra.mrb[14].mxu0 %v3749_v32  ;;  %3076 = vmatmul.mubr.f32.gmra.mrb[56].mxu1 %v3749_v32 }
 0xbf4   :  { %3538 = vmatpush3.bf16.msra.mxu0 %v3997_v14 }
 0xbf5   :  { %3540 = vmatprep.subr.bf16.mxu0 %v3999_v19 }
 0xbf8   :  { %3542 = vmatpush3.bf16.msra.mxu0 %v3999_v19 }
 0xbf9   :  { %3544 = vmatprep.subr.bf16.mxu0 %v4004_v25 }
 0xbfc   :  { %3546 = vmatpush3.bf16.msra.mxu0 %v4004_v25 }
 0xbfd   :  { %3548 = vmatprep.subr.bf16.mxu0 %v4008_v31 }
 0xc00   :  { %3550 = vmatpush3.bf16.msra.mxu0 %v4008_v31 }
 0xc01   :  { %3552 = vmatprep.subr.bf16.mxu0 %v4012_v37 }
 0xc04   :  { %3554 = vmatpush3.bf16.msra.mxu0 %v4012_v37 }
 0xc05   :  { %3556 = vmatprep.subr.bf16.mxu0 %v4016_v42 }
 0xc08   :  { %3558 = vmatpush3.bf16.msra.mxu0 %v4016_v42 }
 0xc09   :  { %3560 = vmatprep.subr.bf16.mxu0 %v4020_v45 }
 0xc0c   :  { %3562 = vmatpush3.bf16.msra.mxu0 %v4020_v45 }
 0xc0d   :  { %3564 = vmatprep.subr.bf16.mxu0 %v4039_v15 }
 0xc10   :  { %3566 = vmatpush3.bf16.msra.mxu0 %v4039_v15 }
 0xc11   :  { %3568 = vmatprep.subr.bf16.mxu0 %v3997_v14 }
 0xcc6   :  { %v2936_v57 = vpop.f32.mrb[14].mxu0  ;;  %v3077_v58 = vpop.f32.mrb[56].mxu1 }
 0xcc7   :  { %v1526_v59 = vadd.f32 %v2936_v57, %v336_v40  ;;  %v1950_v62 = vadd.f32 %v3077_v58, %v4209_v60  ;;  %v1516_v63 = vpop.f32.mrb[15].mxu0  ;;  %v1944_v0 = vpop.f32.mrb[57].mxu1 }
 0xcc8   :  { %v1525_v23 = vadd.f32 %v1516_v63, %v331_v41  ;;  %v1945_v1 = vadd.f32 %v4209_v60, %v1944_v0 }
 0xcc9   :  { %2008 = vst [vmem:[#allocation11 + $0xc8] sm:$0xff] %v1950_v62 }
 0xcca   :  { %3750 = vtanh.f32 %v1525_v23  ;;  %2007 = vst [vmem:[#allocation11 + $0xc0] sm:$0xff] %v1945_v1 }
 0xccb   :  { %3752 = vtanh.f32 %v1526_v59 }
 0xcd4   :  { %v3751_v4 = vpop.eup %3750 }
 0xcd5   :  { %v3753_v5 = vpop.eup %3752  ;;  %2969 = vmatprep.mubr.f32.mxu0 %v3751_v4  ;;  %3078 = vmatprep.mubr.f32.mxu1 %v3751_v4 }
 0xcd6   :  { %2970 = vmatmul.mubr.f32.vlgmr.msra.gmra.mrb[16].mxu0 %v3753_v5  ;;  %3079 = vmatmul.mubr.f32.gmra.mrb[58].mxu1 %v3753_v5 }
 0xcd7   :  { %3570 = vmatpush3.bf16.msra.mxu0 %v3997_v14  ;;  %v3762_v14 = vld [vmem:[%s4435_s2] ss:$0 sm:$0xff]  ;;  %s3887_s2 = smov [#allocation11]  }
 0xcd8   :  { %3572 = vmatprep.subr.bf16.mxu0 %v3999_v19  ;;  %s2020_s26 = sshll.u32 %s3887_s2, 4  ;;  %s2021_s26 = int_to_ptr.vmem [resolvable:$true] %s2020_s26 }
 0xcd9   :  { %s3851_s27 = scalar_lea.vmem %s2021_s26, 4096  ;;  %p3856_p5 = scmp.lt.s32.totalorder %s2021_s26, %s2021_s26 }
 0xcda   :  { %p3852_p4 = scmp.ne.s32.totalorder %s2021_s26, %s3851_s27  ;;  %p3857_p6 = scmp.lt.s32.totalorder %s3851_s27, %s3851_s27 }
 0xcdb   :  { %3574 = vmatpush3.bf16.msra.mxu0 %v3999_v19  ;;  %v346_v19 = vadd.f32 %v3762_v14, %v4108_v46  ;;  %v356_v46 = vadd.f32 %v3762_v14, %v4112_v48 }
 0xcdc   :  { %3576 = vmatprep.subr.bf16.mxu0 %v4004_v25  ;;  %p3858_p7 = por %p3857_p6, %p3856_p5 }
 0xcde   :  { %p3859_p8 = pnand %p3858_p7, %p3852_p4 }
 0xcdf   :  { %3578 = vmatpush3.bf16.msra.mxu0 %v4004_v25  ;;  %v341_v25 = vadd.f32 %v3762_v14, %v4110_v47  ;;  %v351_v47 = vadd.f32 %v3762_v14, %v4114_v49 }
 0xce0   :  { %3580 = vmatprep.subr.bf16.mxu0 %v4008_v31 }
 0xce3   :  { %3582 = vmatpush3.bf16.msra.mxu0 %v4008_v31 }
 0xce4   :  { %3584 = vmatprep.subr.bf16.mxu0 %v4012_v37 }
 0xce7   :  { %3586 = vmatpush3.bf16.msra.mxu0 %v4012_v37 }
 0xce8   :  { %3588 = vmatprep.subr.bf16.mxu0 %v4016_v42 }
 0xceb   :  { %3590 = vmatpush3.bf16.msra.mxu0 %v4016_v42 }
 0xcec   :  { %3592 = vmatprep.subr.bf16.mxu0 %v4020_v45 }
 0xcef   :  { %3594 = vmatpush3.bf16.msra.mxu0 %v4020_v45 }
 0xcf0   :  { %3596 = vmatprep.subr.bf16.mxu0 %v4039_v15 }
 0xcf3   :  { %3598 = vmatpush3.bf16.msra.mxu0 %v4039_v15 }
 0xda9   :  { %v2971_v31 = vpop.f32.mrb[16].mxu0  ;;  %v3080_v37 = vpop.f32.mrb[58].mxu1 }
 0xdaa   :  { %v1612_v17 = vadd.f32 %v2971_v31, %v346_v19  ;;  %v1960_v42 = vadd.f32 %v3080_v37, %v4209_v60  ;;  %v1602_v43 = vpop.f32.mrb[17].mxu0  ;;  %v1954_v44 = vpop.f32.mrb[59].mxu1 }
 0xdab   :  { %v1611_v45 = vadd.f32 %v1602_v43, %v341_v25  ;;  %v1955_v33 = vadd.f32 %v4209_v60, %v1954_v44 }
 0xdac   :  { %2010 = vst [vmem:[#allocation11 + $0xd8] sm:$0xff] %v1960_v42 }
 0xdad   :  { %3754 = vtanh.f32 %v1611_v45  ;;  %2009 = vst [vmem:[#allocation11 + $0xd0] sm:$0xff] %v1955_v33 }
 0xdae   :  { %3756 = vtanh.f32 %v1612_v17 }
 0xdb7   :  { %v3755_v15 = vpop.eup %3754 }
 0xdb8   :  { %v3757_v34 = vpop.eup %3756  ;;  %3004 = vmatprep.mubr.f32.mxu0 %v3755_v15  ;;  %3081 = vmatprep.mubr.f32.mxu1 %v3755_v15 }
 0xdb9   :  { %3005 = vmatmul.mubr.f32.vlgmr.msra.gmra.mrb[18].mxu0 %v3757_v34  ;;  %3082 = vmatmul.mubr.f32.gmra.mrb[60].mxu1 %v3757_v34 }
 0xe8c   :  { %v3006_v6 = vpop.f32.mrb[18].mxu0  ;;  %v3083_v7 = vpop.f32.mrb[60].mxu1 }
 0xe8d   :  { %v1698_v8 = vadd.f32 %v3006_v6, %v356_v46  ;;  %v1970_v24 = vadd.f32 %v3083_v7, %v4209_v60  ;;  %v1688_v26 = vpop.f32.mrb[19].mxu0  ;;  %v1964_v27 = vpop.f32.mrb[61].mxu1 }
 0xe8e   :  { %v1697_v54 = vadd.f32 %v1688_v26, %v351_v47  ;;  %v1965_v55 = vadd.f32 %v4209_v60, %v1964_v27 }
 0xe8f   :  { %2012 = vst [vmem:[#allocation11 + $0xe8] sm:$0xff] %v1970_v24 }
 0xe90   :  { %3758 = vtanh.f32 %v1697_v54  ;;  %2011 = vst [vmem:[#allocation11 + $0xe0] sm:$0xff] %v1965_v55 }
 0xe91   :  { %3760 = vtanh.f32 %v1698_v8 }
 0xe9a   :  { %v3759_v61 = vpop.eup %3758 }
 0xe9b   :  { %v3761_v2 = vpop.eup %3760  ;;  %3084 = vmatprep.mubr.f32.mxu1 %v3759_v61 }
 0xe9c   :  { %3085 = vmatmul.mubr.f32.gmra.mrb[62].mxu1 %v3761_v2 }
 0xf6f   :  { %v3086_v48 = vpop.f32.mrb[62].mxu1 }
 0xf70   :  { %v1980_v49 = vadd.f32 %v3086_v48, %v4209_v60  ;;  %v1974_v35 = vpop.f32.mrb[63].mxu1 }
 0xf71   :  { %v1975_v36 = vadd.f32 %v4209_v60, %v1974_v35 }
 0xf72   :  { %2014 = vst [vmem:[#allocation11 + $0xf8] sm:$0xff] %v1980_v49 }
 0xf73   :  { %2013 = vst [vmem:[#allocation11 + $0xf0] sm:$0xff] %v1975_v36 }
 0xf74   :  { %3862 = shalt.err (!%p3859_p8)
}
 0xf75   :  { %s3863_s30 = scalar_lea.hbm %s4439_s6, 4096 }
 0xf76   :  { %p3864_p9 = scmp.ne.s32.totalorder %s4439_s6, %s3863_s30  ;;  %p3867_p10 = scmp.lt.u32.totalorder %s3863_s30, %s4439_s6 }
 0xf78   :  { %p3869_p11 = pnand %p3867_p10, %p3864_p9 }
 0xf7a   :  { %3872 = shalt.err (!%p3869_p11)
}
 0xf7b   :  { %2026 = dma.vmem_to_hbm [thread:$0]  %s2021_s26, 4096, %s4439_s6, [#allocation5], %s3883_s9, %s3883_s9, %s3884_s10  }
 0xf7c   :  { %3879 = dma.done.wait [#allocation5], 4096  }
 0xf7d   :  { %3880 = vsyncadd [#allocation5], 4294963200 }
 0xf7e   :  { %2030 = vsyncpa [#allocation4], 1 }
 0xf7f   :  { %2031 = vsyncpa [#allocation7], 1 }
 0xf80   :  { %2032 = vsyncpa [#allocation10], 1 }
 0xf81   :  { %2033 = vsyncpa [#allocation5], 1 }

</bundles_post_ra>
